<compile_context>
chip_gen: v6e
topology: v6e:2x2x1
jax: 0.10.0
libtpu: 0.0.40
codegen_flags: <defaults>
</compile_context>

<pallas_src>
import math
import functools

import jax
import jax.numpy as jnp
from jax.experimental import pallas as pl
from jax.experimental.pallas import tpu as pltpu


def _round_up(x, m):
    return ((x + m - 1) // m) * m


# ----------------------------------------------------------------------------
# Pallas kernel: N fused chains of 1x1-conv (BN folded) (+ReLU) layers.
# refs layout (all inputs first, then outputs):
#   for each chain c: x_c (C_in, tm) bf16, then (w_l (Cout,Cin) bf16,
#                     shift_l (Cout,1) f32) for each layer l
#   then one output ref (C_out, tm) f32 per chain.
# ----------------------------------------------------------------------------
def _chains_kernel(*refs, relu_flags_per_chain, tc):
    n_chains = len(relu_flags_per_chain)
    # Split the flat ref list per chain.
    pos = 0
    chain_in_refs = []
    for flags in relu_flags_per_chain:
        cnt = 1 + 2 * len(flags)
        chain_in_refs.append(refs[pos:pos + cnt])
        pos += cnt
    out_refs = refs[pos:pos + n_chains]

    for ci in range(n_chains):
        crefs = chain_in_refs[ci]
        flags = relu_flags_per_chain[ci]
        x_ref = crefs[0]
        o_ref = out_refs[ci]
        n_layers = len(flags)

        # Weights / shifts are resident (constant index_map) — load once per step.
        ws = [crefs[1 + 2 * l][...] for l in range(n_layers)]   # bf16 (Cout, Cin)
        ss = [crefs[2 + 2 * l][...] for l in range(n_layers)]   # f32  (Cout, 1)

        tm = x_ref.shape[-1]
        n_chunks = tm // tc
        for j in range(n_chunks):                 # static unrolled chunk loop
            lo = j * tc                           # static slice -> free ref view
            h = x_ref[:, lo:lo + tc]              # bf16 (C_in, tc)
            for l in range(n_layers):
                acc = jnp.dot(ws[l], h, preferred_element_type=jnp.float32) + ss[l]
                if flags[l]:
                    acc = jnp.maximum(acc, 0.0)
                if l + 1 < n_layers:
                    h = acc.astype(jnp.bfloat16)  # bf16 between layers (MXU input)
                else:
                    o_ref[:, lo:lo + tc] = acc.astype(o_ref.dtype)


def _run_chains(jobs):
    """jobs: list of (layers, x_nchw); all inputs must share (B, H, W).
    layers: list of (w_bf16 (Cout,Cin), shift_f32 (Cout,1), relu_flag)."""
    B, _, H, W = jobs[0][1].shape
    HW = H * W
    Mp = _round_up(HW, 128)                       # minimal padding only

    # Spatial tile: as large as possible, capped so one activation block ~<= 2 MiB.
    max_c = 1
    for layers, x in jobs:
        max_c = max(max_c, x.shape[1], max(w.shape[0] for (w, _, _) in layers))
    cap = max(512, min(8192, ((2 << 20) // (max_c * 4)) // 128 * 128))
    tm = min(cap, Mp)
    # Inner lane sub-chunk: keeps intermediates register-resident.
    tc = 512 if tm % 512 == 0 else (256 if tm % 256 == 0 else 128)
    assert tm % tc == 0

    flat_inputs, in_specs = [], []
    out_shapes, out_specs = [], []
    relu_flags_per_chain = []
    for layers, x in jobs:
        c_in = x.shape[1]
        x3 = x.reshape(B, c_in, HW).astype(jnp.bfloat16)   # free reshape (NCHW)
        if Mp != HW:
            x3 = jnp.pad(x3, ((0, 0), (0, 0), (0, Mp - HW)))
        flat_inputs.append(x3)
        in_specs.append(pl.BlockSpec((None, c_in, tm), lambda b, m: (b, 0, m)))
        for (w, s, _) in layers:
            flat_inputs.append(w)
            flat_inputs.append(s)
            in_specs.append(pl.BlockSpec(w.shape, lambda b, m: (0, 0)))   # resident
            in_specs.append(pl.BlockSpec(s.shape, lambda b, m: (0, 0)))   # resident
        relu_flags_per_chain.append(tuple(bool(r) for (_, _, r) in layers))
        c_out = layers[-1][0].shape[0]
        out_shapes.append(jax.ShapeDtypeStruct((B, c_out, Mp), jnp.float32))
        out_specs.append(pl.BlockSpec((None, c_out, tm), lambda b, m: (b, 0, m)))

    kern = functools.partial(_chains_kernel,
                             relu_flags_per_chain=tuple(relu_flags_per_chain),
                             tc=tc)
    outs = pl.pallas_call(
        kern,
        out_shape=tuple(out_shapes),
        grid_spec=pltpu.PrefetchScalarGridSpec(
            num_scalar_prefetch=0,
            grid=(B, pl.cdiv(Mp, tm)),
            in_specs=in_specs,
            out_specs=tuple(out_specs)),
        compiler_params=pltpu.CompilerParams(
            dimension_semantics=("parallel", "parallel"),
            vmem_limit_bytes=48 * 1024 * 1024),
    )(*flat_inputs)

    results = []
    for (layers, _), y in zip(jobs, outs):
        c_out = layers[-1][0].shape[0]
        if Mp != HW:
            y = y[:, :, :HW]
        results.append(y.reshape(B, c_out, H, W))
    return results


# ----------------------------------------------------------------------------
# Parameter init (deterministic; eval-mode BN folded into weight + shift, f32)
# ----------------------------------------------------------------------------
def init_conv_block(key, cin, cout, bn):
    kw, kb, kg, kbeta = jax.random.split(key, 4)
    w = jax.random.normal(kw, (cout, cin), jnp.float32) * (1.0 / math.sqrt(cin))
    b = jax.random.normal(kb, (cout,), jnp.float32) * 0.01
    eps = 1e-5
    if bn:
        gamma = 1.0 + 0.1 * jax.random.normal(kg, (cout,), jnp.float32)
        beta = 0.1 * jax.random.normal(kbeta, (cout,), jnp.float32)
        running_mean = jnp.zeros((cout,), jnp.float32)
        running_var = jnp.ones((cout,), jnp.float32)
        s = gamma / jnp.sqrt(running_var + eps)
        w = w * s[:, None]                       # fold BN scale into weight rows
        shift = (b - running_mean) * s + beta
    else:
        shift = b
    return w, shift.reshape(cout, 1)


def _layer_specs(in_dim, out_dim, latent_dim):
    # (cin, cout, bn, relu) per Conv_BN_Relu block — matches DualProjectionNet.
    return {
        "encoder1": [(in_dim, in_dim // 2 + latent_dim, True, True),
                     (in_dim // 2 + latent_dim, 2 * latent_dim, True, True)],
        "shared":   [(2 * latent_dim, latent_dim, False, False)],
        "decoder1": [(latent_dim, 2 * latent_dim, True, True),
                     (2 * latent_dim, out_dim // 2 + latent_dim, True, True),
                     (out_dim // 2 + latent_dim, out_dim, False, False)],
        "encoder2": [(out_dim, out_dim // 2 + latent_dim, True, True),
                     (out_dim // 2 + latent_dim, 2 * latent_dim, True, True)],
        "decoder2": [(latent_dim, 2 * latent_dim, True, True),
                     (2 * latent_dim, in_dim // 2 + latent_dim, True, True),
                     (in_dim // 2 + latent_dim, in_dim, False, False)],
    }


def init_dual_projection_params(key, in_dim, out_dim, latent_dim):
    specs = _layer_specs(in_dim, out_dim, latent_dim)
    keys = jax.random.split(key, sum(len(v) for v in specs.values()))
    params, ki = {}, 0
    for name, layer_specs in specs.items():
        layers = []
        for (cin, cout, bn, relu) in layer_specs:
            w, shift = init_conv_block(keys[ki], cin, cout, bn)
            layers.append((w, shift, relu))
            ki += 1
        params[name] = layers
    return params


# ----------------------------------------------------------------------------
# Forward pass
# ----------------------------------------------------------------------------
def _build_chain(encoder, shared, decoder):
    """encoder -> shared_coder -> decoder, with the (linear, ReLU-free) shared layer
    folded into decoder[0]. Weights cast to bf16, shifts kept f32."""
    w_s, s_s, _ = shared[0]
    w_d0, s_d0, relu_d0 = decoder[0]
    w_f = w_d0 @ w_s                              # (2L, L) @ (L, 2L) -> (2L, 2L)
    s_f = w_d0 @ s_s + s_d0
    layers = list(encoder) + [(w_f, s_f, relu_d0)] + list(decoder[1:])
    return [(w.astype(jnp.bfloat16), s.astype(jnp.float32), r) for (w, s, r) in layers]


def dual_projection_forward(params, xs, xt):
    # xt_hat = decoder1(shared(encoder1(xs))); xs_hat = decoder2(shared(encoder2(xt)))
    chain1 = _build_chain(params["encoder1"], params["shared"], params["decoder1"])
    chain2 = _build_chain(params["encoder2"], params["shared"], params["decoder2"])
    if xs.shape[0] == xt.shape[0] and xs.shape[2:] == xt.shape[2:]:
        # Single fused pallas_call running both branches per grid step.
        xt_hat, xs_hat = _run_chains([(chain1, xs), (chain2, xt)])
    else:
        (xt_hat,) = _run_chains([(chain1, xs)])
        (xs_hat,) = _run_chains([(chain2, xt)])
    return xs_hat, xt_hat


# ----------------------------------------------------------------------------
# Demo
# ----------------------------------------------------------------------------
if __name__ == "__main__":
    B, H, W = 2, 16, 16
    in_dim, out_dim, latent_dim = 32, 32, 16

    key = jax.random.PRNGKey(0)
    k_params, k_xs, k_xt = jax.random.split(key, 3)

    params = init_dual_projection_params(k_params, in_dim, out_dim, latent_dim)
    xs = jax.random.normal(k_xs, (B, in_dim, H, W), jnp.float32)
    xt = jax.random.normal(k_xt, (B, out_dim, H, W), jnp.float32)

    xs_hat, xt_hat = dual_projection_forward(params, xs, xt)
    jax.block_until_ready((xs_hat, xt_hat))

    assert xs_hat.shape == (B, in_dim, H, W)
    assert xt_hat.shape == (B, out_dim, H, W)
    assert bool(jnp.all(jnp.isfinite(xs_hat))) and bool(jnp.all(jnp.isfinite(xt_hat)))
    print("KERNEL_OK")
</pallas_src>

<mosaic_0001>
module attributes {stable_mosaic.version = 11 : i64} {
  func.func @_chains_kernel(%arg0: i32, %arg1: i32, %arg2: memref<1x32x256xbf16, #tpu.memory_space<vmem>>, %arg3: memref<32x32xbf16, #tpu.memory_space<vmem>>, %arg4: memref<32x1xf32, #tpu.memory_space<vmem>>, %arg5: memref<32x32xbf16, #tpu.memory_space<vmem>>, %arg6: memref<32x1xf32, #tpu.memory_space<vmem>>, %arg7: memref<32x32xbf16, #tpu.memory_space<vmem>>, %arg8: memref<32x1xf32, #tpu.memory_space<vmem>>, %arg9: memref<32x32xbf16, #tpu.memory_space<vmem>>, %arg10: memref<32x1xf32, #tpu.memory_space<vmem>>, %arg11: memref<32x32xbf16, #tpu.memory_space<vmem>>, %arg12: memref<32x1xf32, #tpu.memory_space<vmem>>, %arg13: memref<1x32x256xbf16, #tpu.memory_space<vmem>>, %arg14: memref<32x32xbf16, #tpu.memory_space<vmem>>, %arg15: memref<32x1xf32, #tpu.memory_space<vmem>>, %arg16: memref<32x32xbf16, #tpu.memory_space<vmem>>, %arg17: memref<32x1xf32, #tpu.memory_space<vmem>>, %arg18: memref<32x32xbf16, #tpu.memory_space<vmem>>, %arg19: memref<32x1xf32, #tpu.memory_space<vmem>>, %arg20: memref<32x32xbf16, #tpu.memory_space<vmem>>, %arg21: memref<32x1xf32, #tpu.memory_space<vmem>>, %arg22: memref<32x32xbf16, #tpu.memory_space<vmem>>, %arg23: memref<32x1xf32, #tpu.memory_space<vmem>>, %arg24: memref<1x32x256xf32, #tpu.memory_space<vmem>>, %arg25: memref<1x32x256xf32, #tpu.memory_space<vmem>>) attributes {dimension_semantics = [#tpu.dimension_semantics<parallel>, #tpu.dimension_semantics<parallel>], iteration_bounds = array<i64: 2, 1>, scalar_prefetch = 0 : i64, scratch_operands = 0 : i64, tpu.core_type = #tpu.core_type<tc>, window_params = [{transform_indices = @transform_0, window_bounds = array<i64: 1, 32, 256>}, {pipeline_mode = #tpu.pipeline_mode<synchronous>, transform_indices = @transform_1, window_bounds = array<i64: 32, 32>}, {pipeline_mode = #tpu.pipeline_mode<synchronous>, transform_indices = @transform_2, window_bounds = array<i64: 32, 1>}, {pipeline_mode = #tpu.pipeline_mode<synchronous>, transform_indices = @transform_3, window_bounds = array<i64: 32, 32>}, {pipeline_mode = #tpu.pipeline_mode<synchronous>, transform_indices = @transform_4, window_bounds = array<i64: 32, 1>}, {pipeline_mode = #tpu.pipeline_mode<synchronous>, transform_indices = @transform_5, window_bounds = array<i64: 32, 32>}, {pipeline_mode = #tpu.pipeline_mode<synchronous>, transform_indices = @transform_6, window_bounds = array<i64: 32, 1>}, {pipeline_mode = #tpu.pipeline_mode<synchronous>, transform_indices = @transform_7, window_bounds = array<i64: 32, 32>}, {pipeline_mode = #tpu.pipeline_mode<synchronous>, transform_indices = @transform_8, window_bounds = array<i64: 32, 1>}, {pipeline_mode = #tpu.pipeline_mode<synchronous>, transform_indices = @transform_9, window_bounds = array<i64: 32, 32>}, {pipeline_mode = #tpu.pipeline_mode<synchronous>, transform_indices = @transform_10, window_bounds = array<i64: 32, 1>}, {transform_indices = @transform_11, window_bounds = array<i64: 1, 32, 256>}, {pipeline_mode = #tpu.pipeline_mode<synchronous>, transform_indices = @transform_12, window_bounds = array<i64: 32, 32>}, {pipeline_mode = #tpu.pipeline_mode<synchronous>, transform_indices = @transform_13, window_bounds = array<i64: 32, 1>}, {pipeline_mode = #tpu.pipeline_mode<synchronous>, transform_indices = @transform_14, window_bounds = array<i64: 32, 32>}, {pipeline_mode = #tpu.pipeline_mode<synchronous>, transform_indices = @transform_15, window_bounds = array<i64: 32, 1>}, {pipeline_mode = #tpu.pipeline_mode<synchronous>, transform_indices = @transform_16, window_bounds = array<i64: 32, 32>}, {pipeline_mode = #tpu.pipeline_mode<synchronous>, transform_indices = @transform_17, window_bounds = array<i64: 32, 1>}, {pipeline_mode = #tpu.pipeline_mode<synchronous>, transform_indices = @transform_18, window_bounds = array<i64: 32, 32>}, {pipeline_mode = #tpu.pipeline_mode<synchronous>, transform_indices = @transform_19, window_bounds = array<i64: 32, 1>}, {pipeline_mode = #tpu.pipeline_mode<synchronous>, transform_indices = @transform_20, window_bounds = array<i64: 32, 32>}, {pipeline_mode = #tpu.pipeline_mode<synchronous>, transform_indices = @transform_21, window_bounds = array<i64: 32, 1>}, {transform_indices = @transform_22, window_bounds = array<i64: 1, 32, 256>}, {transform_indices = @transform_23, window_bounds = array<i64: 1, 32, 256>}]} {
    %c0 = arith.constant 0 : index
    %c0_0 = arith.constant 0 : index
    %0 = vector.load %arg3[%c0, %c0_0] : memref<32x32xbf16, #tpu.memory_space<vmem>>, vector<32x32xbf16>
    %c0_1 = arith.constant 0 : index
    %c0_2 = arith.constant 0 : index
    %1 = vector.load %arg5[%c0_1, %c0_2] : memref<32x32xbf16, #tpu.memory_space<vmem>>, vector<32x32xbf16>
    %c0_3 = arith.constant 0 : index
    %c0_4 = arith.constant 0 : index
    %2 = vector.load %arg7[%c0_3, %c0_4] : memref<32x32xbf16, #tpu.memory_space<vmem>>, vector<32x32xbf16>
    %c0_5 = arith.constant 0 : index
    %c0_6 = arith.constant 0 : index
    %3 = vector.load %arg9[%c0_5, %c0_6] : memref<32x32xbf16, #tpu.memory_space<vmem>>, vector<32x32xbf16>
    %c0_7 = arith.constant 0 : index
    %c0_8 = arith.constant 0 : index
    %4 = vector.load %arg11[%c0_7, %c0_8] : memref<32x32xbf16, #tpu.memory_space<vmem>>, vector<32x32xbf16>
    %c0_9 = arith.constant 0 : index
    %c0_10 = arith.constant 0 : index
    %5 = vector.load %arg4[%c0_9, %c0_10] : memref<32x1xf32, #tpu.memory_space<vmem>>, vector<32x1xf32>
    %c0_11 = arith.constant 0 : index
    %c0_12 = arith.constant 0 : index
    %6 = vector.load %arg6[%c0_11, %c0_12] : memref<32x1xf32, #tpu.memory_space<vmem>>, vector<32x1xf32>
    %c0_13 = arith.constant 0 : index
    %c0_14 = arith.constant 0 : index
    %7 = vector.load %arg8[%c0_13, %c0_14] : memref<32x1xf32, #tpu.memory_space<vmem>>, vector<32x1xf32>
    %c0_15 = arith.constant 0 : index
    %c0_16 = arith.constant 0 : index
    %8 = vector.load %arg10[%c0_15, %c0_16] : memref<32x1xf32, #tpu.memory_space<vmem>>, vector<32x1xf32>
    %c0_17 = arith.constant 0 : index
    %c0_18 = arith.constant 0 : index
    %9 = vector.load %arg12[%c0_17, %c0_18] : memref<32x1xf32, #tpu.memory_space<vmem>>, vector<32x1xf32>
    %c0_19 = arith.constant 0 : index
    %c0_20 = arith.constant 0 : index
    %c0_21 = arith.constant 0 : index
    %10 = vector.load %arg2[%c0_19, %c0_20, %c0_21] : memref<1x32x256xbf16, #tpu.memory_space<vmem>>, vector<1x32x256xbf16>
    %11 = vector.shape_cast %10 : vector<1x32x256xbf16> to vector<32x256xbf16>
    %cst = arith.constant dense<0.000000e+00> : vector<32x256xf32>
    %12 = tpu.matmul %0, %11, %cst {dimension_numbers = #tpu.dot_dimension_numbers<[1], [0], [0], [1], [0, 0, 1, 1], [], []>} : vector<32x32xbf16>, vector<32x256xbf16>, vector<32x256xf32> -> vector<32x256xf32>
    %13 = vector.broadcast %5 : vector<32x1xf32> to vector<32x256xf32>
    %14 = arith.addf %12, %13 : vector<32x256xf32>
    %cst_22 = arith.constant 0.000000e+00 : f32
    %15 = vector.broadcast %cst_22 : f32 to vector<32x256xf32>
    %16 = arith.maximumf %14, %15 : vector<32x256xf32>
    %17 = arith.truncf %16 : vector<32x256xf32> to vector<32x256xbf16>
    %cst_23 = arith.constant dense<0.000000e+00> : vector<32x256xf32>
    %18 = tpu.matmul %1, %17, %cst_23 {dimension_numbers = #tpu.dot_dimension_numbers<[1], [0], [0], [1], [0, 0, 1, 1], [], []>} : vector<32x32xbf16>, vector<32x256xbf16>, vector<32x256xf32> -> vector<32x256xf32>
    %19 = vector.broadcast %6 : vector<32x1xf32> to vector<32x256xf32>
    %20 = arith.addf %18, %19 : vector<32x256xf32>
    %cst_24 = arith.constant 0.000000e+00 : f32
    %21 = vector.broadcast %cst_24 : f32 to vector<32x256xf32>
    %22 = arith.maximumf %20, %21 : vector<32x256xf32>
    %23 = arith.truncf %22 : vector<32x256xf32> to vector<32x256xbf16>
    %cst_25 = arith.constant dense<0.000000e+00> : vector<32x256xf32>
    %24 = tpu.matmul %2, %23, %cst_25 {dimension_numbers = #tpu.dot_dimension_numbers<[1], [0], [0], [1], [0, 0, 1, 1], [], []>} : vector<32x32xbf16>, vector<32x256xbf16>, vector<32x256xf32> -> vector<32x256xf32>
    %25 = vector.broadcast %7 : vector<32x1xf32> to vector<32x256xf32>
    %26 = arith.addf %24, %25 : vector<32x256xf32>
    %cst_26 = arith.constant 0.000000e+00 : f32
    %27 = vector.broadcast %cst_26 : f32 to vector<32x256xf32>
    %28 = arith.maximumf %26, %27 : vector<32x256xf32>
    %29 = arith.truncf %28 : vector<32x256xf32> to vector<32x256xbf16>
    %cst_27 = arith.constant dense<0.000000e+00> : vector<32x256xf32>
    %30 = tpu.matmul %3, %29, %cst_27 {dimension_numbers = #tpu.dot_dimension_numbers<[1], [0], [0], [1], [0, 0, 1, 1], [], []>} : vector<32x32xbf16>, vector<32x256xbf16>, vector<32x256xf32> -> vector<32x256xf32>
    %31 = vector.broadcast %8 : vector<32x1xf32> to vector<32x256xf32>
    %32 = arith.addf %30, %31 : vector<32x256xf32>
    %cst_28 = arith.constant 0.000000e+00 : f32
    %33 = vector.broadcast %cst_28 : f32 to vector<32x256xf32>
    %34 = arith.maximumf %32, %33 : vector<32x256xf32>
    %35 = arith.truncf %34 : vector<32x256xf32> to vector<32x256xbf16>
    %cst_29 = arith.constant dense<0.000000e+00> : vector<32x256xf32>
    %36 = tpu.matmul %4, %35, %cst_29 {dimension_numbers = #tpu.dot_dimension_numbers<[1], [0], [0], [1], [0, 0, 1, 1], [], []>} : vector<32x32xbf16>, vector<32x256xbf16>, vector<32x256xf32> -> vector<32x256xf32>
    %37 = vector.broadcast %9 : vector<32x1xf32> to vector<32x256xf32>
    %38 = arith.addf %36, %37 : vector<32x256xf32>
    %c0_30 = arith.constant 0 : index
    %c0_31 = arith.constant 0 : index
    %c0_32 = arith.constant 0 : index
    %39 = vector.load %arg24[%c0_30, %c0_31, %c0_32] : memref<1x32x256xf32, #tpu.memory_space<vmem>>, vector<1x32x256xf32>
    %40 = vector.shape_cast %39 : vector<1x32x256xf32> to vector<32x256xf32>
    %41 = vector.shape_cast %38 : vector<32x256xf32> to vector<1x32x256xf32>
    tpu.vector_store %arg24[%c0_30, %c0_31, %c0_32], %41 {strides = array<i32>} : memref<1x32x256xf32, #tpu.memory_space<vmem>>, vector<1x32x256xf32>,
    %c0_33 = arith.constant 0 : index
    %c0_34 = arith.constant 0 : index
    %42 = vector.load %arg14[%c0_33, %c0_34] : memref<32x32xbf16, #tpu.memory_space<vmem>>, vector<32x32xbf16>
    %c0_35 = arith.constant 0 : index
    %c0_36 = arith.constant 0 : index
    %43 = vector.load %arg16[%c0_35, %c0_36] : memref<32x32xbf16, #tpu.memory_space<vmem>>, vector<32x32xbf16>
    %c0_37 = arith.constant 0 : index
    %c0_38 = arith.constant 0 : index
    %44 = vector.load %arg18[%c0_37, %c0_38] : memref<32x32xbf16, #tpu.memory_space<vmem>>, vector<32x32xbf16>
    %c0_39 = arith.constant 0 : index
    %c0_40 = arith.constant 0 : index
    %45 = vector.load %arg20[%c0_39, %c0_40] : memref<32x32xbf16, #tpu.memory_space<vmem>>, vector<32x32xbf16>
    %c0_41 = arith.constant 0 : index
    %c0_42 = arith.constant 0 : index
    %46 = vector.load %arg22[%c0_41, %c0_42] : memref<32x32xbf16, #tpu.memory_space<vmem>>, vector<32x32xbf16>
    %c0_43 = arith.constant 0 : index
    %c0_44 = arith.constant 0 : index
    %47 = vector.load %arg15[%c0_43, %c0_44] : memref<32x1xf32, #tpu.memory_space<vmem>>, vector<32x1xf32>
    %c0_45 = arith.constant 0 : index
    %c0_46 = arith.constant 0 : index
    %48 = vector.load %arg17[%c0_45, %c0_46] : memref<32x1xf32, #tpu.memory_space<vmem>>, vector<32x1xf32>
    %c0_47 = arith.constant 0 : index
    %c0_48 = arith.constant 0 : index
    %49 = vector.load %arg19[%c0_47, %c0_48] : memref<32x1xf32, #tpu.memory_space<vmem>>, vector<32x1xf32>
    %c0_49 = arith.constant 0 : index
    %c0_50 = arith.constant 0 : index
    %50 = vector.load %arg21[%c0_49, %c0_50] : memref<32x1xf32, #tpu.memory_space<vmem>>, vector<32x1xf32>
    %c0_51 = arith.constant 0 : index
    %c0_52 = arith.constant 0 : index
    %51 = vector.load %arg23[%c0_51, %c0_52] : memref<32x1xf32, #tpu.memory_space<vmem>>, vector<32x1xf32>
    %c0_53 = arith.constant 0 : index
    %c0_54 = arith.constant 0 : index
    %c0_55 = arith.constant 0 : index
    %52 = vector.load %arg13[%c0_53, %c0_54, %c0_55] : memref<1x32x256xbf16, #tpu.memory_space<vmem>>, vector<1x32x256xbf16>
    %53 = vector.shape_cast %52 : vector<1x32x256xbf16> to vector<32x256xbf16>
    %cst_56 = arith.constant dense<0.000000e+00> : vector<32x256xf32>
    %54 = tpu.matmul %42, %53, %cst_56 {dimension_numbers = #tpu.dot_dimension_numbers<[1], [0], [0], [1], [0, 0, 1, 1], [], []>} : vector<32x32xbf16>, vector<32x256xbf16>, vector<32x256xf32> -> vector<32x256xf32>
    %55 = vector.broadcast %47 : vector<32x1xf32> to vector<32x256xf32>
    %56 = arith.addf %54, %55 : vector<32x256xf32>
    %cst_57 = arith.constant 0.000000e+00 : f32
    %57 = vector.broadcast %cst_57 : f32 to vector<32x256xf32>
    %58 = arith.maximumf %56, %57 : vector<32x256xf32>
    %59 = arith.truncf %58 : vector<32x256xf32> to vector<32x256xbf16>
    %cst_58 = arith.constant dense<0.000000e+00> : vector<32x256xf32>
    %60 = tpu.matmul %43, %59, %cst_58 {dimension_numbers = #tpu.dot_dimension_numbers<[1], [0], [0], [1], [0, 0, 1, 1], [], []>} : vector<32x32xbf16>, vector<32x256xbf16>, vector<32x256xf32> -> vector<32x256xf32>
    %61 = vector.broadcast %48 : vector<32x1xf32> to vector<32x256xf32>
    %62 = arith.addf %60, %61 : vector<32x256xf32>
    %cst_59 = arith.constant 0.000000e+00 : f32
    %63 = vector.broadcast %cst_59 : f32 to vector<32x256xf32>
    %64 = arith.maximumf %62, %63 : vector<32x256xf32>
    %65 = arith.truncf %64 : vector<32x256xf32> to vector<32x256xbf16>
    %cst_60 = arith.constant dense<0.000000e+00> : vector<32x256xf32>
    %66 = tpu.matmul %44, %65, %cst_60 {dimension_numbers = #tpu.dot_dimension_numbers<[1], [0], [0], [1], [0, 0, 1, 1], [], []>} : vector<32x32xbf16>, vector<32x256xbf16>, vector<32x256xf32> -> vector<32x256xf32>
    %67 = vector.broadcast %49 : vector<32x1xf32> to vector<32x256xf32>
    %68 = arith.addf %66, %67 : vector<32x256xf32>
    %cst_61 = arith.constant 0.000000e+00 : f32
    %69 = vector.broadcast %cst_61 : f32 to vector<32x256xf32>
    %70 = arith.maximumf %68, %69 : vector<32x256xf32>
    %71 = arith.truncf %70 : vector<32x256xf32> to vector<32x256xbf16>
    %cst_62 = arith.constant dense<0.000000e+00> : vector<32x256xf32>
    %72 = tpu.matmul %45, %71, %cst_62 {dimension_numbers = #tpu.dot_dimension_numbers<[1], [0], [0], [1], [0, 0, 1, 1], [], []>} : vector<32x32xbf16>, vector<32x256xbf16>, vector<32x256xf32> -> vector<32x256xf32>
    %73 = vector.broadcast %50 : vector<32x1xf32> to vector<32x256xf32>
    %74 = arith.addf %72, %73 : vector<32x256xf32>
    %cst_63 = arith.constant 0.000000e+00 : f32
    %75 = vector.broadcast %cst_63 : f32 to vector<32x256xf32>
    %76 = arith.maximumf %74, %75 : vector<32x256xf32>
    %77 = arith.truncf %76 : vector<32x256xf32> to vector<32x256xbf16>
    %cst_64 = arith.constant dense<0.000000e+00> : vector<32x256xf32>
    %78 = tpu.matmul %46, %77, %cst_64 {dimension_numbers = #tpu.dot_dimension_numbers<[1], [0], [0], [1], [0, 0, 1, 1], [], []>} : vector<32x32xbf16>, vector<32x256xbf16>, vector<32x256xf32> -> vector<32x256xf32>
    %79 = vector.broadcast %51 : vector<32x1xf32> to vector<32x256xf32>
    %80 = arith.addf %78, %79 : vector<32x256xf32>
    %c0_65 = arith.constant 0 : index
    %c0_66 = arith.constant 0 : index
    %c0_67 = arith.constant 0 : index
    %81 = vector.load %arg25[%c0_65, %c0_66, %c0_67] : memref<1x32x256xf32, #tpu.memory_space<vmem>>, vector<1x32x256xf32>
    %82 = vector.shape_cast %81 : vector<1x32x256xf32> to vector<32x256xf32>
    %83 = vector.shape_cast %80 : vector<32x256xf32> to vector<1x32x256xf32>
    tpu.vector_store %arg25[%c0_65, %c0_66, %c0_67], %83 {strides = array<i32>} : memref<1x32x256xf32, #tpu.memory_space<vmem>>, vector<1x32x256xf32>,
    return
  }
  func.func @transform_0(%arg0: i32, %arg1: i32) -> (i32, i32, i32) {
    %c0_i32 = arith.constant 0 : i32
    %c0_i32_0 = arith.constant 0 : i32
    return %arg0, %c0_i32, %arg1 : i32, i32, i32
  }
  func.func @transform_1(%arg0: i32, %arg1: i32) -> (i32, i32) {
    %c0_i32 = arith.constant 0 : i32
    %c0_i32_0 = arith.constant 0 : i32
    %c0_i32_1 = arith.constant 0 : i32
    return %c0_i32, %c0_i32_0 : i32, i32
  }
  func.func @transform_2(%arg0: i32, %arg1: i32) -> (i32, i32) {
    %c0_i32 = arith.constant 0 : i32
    %c0_i32_0 = arith.constant 0 : i32
    %c0_i32_1 = arith.constant 0 : i32
    return %c0_i32, %c0_i32_0 : i32, i32
  }
  func.func @transform_3(%arg0: i32, %arg1: i32) -> (i32, i32) {
    %c0_i32 = arith.constant 0 : i32
    %c0_i32_0 = arith.constant 0 : i32
    %c0_i32_1 = arith.constant 0 : i32
    return %c0_i32, %c0_i32_0 : i32, i32
  }
  func.func @transform_4(%arg0: i32, %arg1: i32) -> (i32, i32) {
    %c0_i32 = arith.constant 0 : i32
    %c0_i32_0 = arith.constant 0 : i32
    %c0_i32_1 = arith.constant 0 : i32
    return %c0_i32, %c0_i32_0 : i32, i32
  }
  func.func @transform_5(%arg0: i32, %arg1: i32) -> (i32, i32) {
    %c0_i32 = arith.constant 0 : i32
    %c0_i32_0 = arith.constant 0 : i32
    %c0_i32_1 = arith.constant 0 : i32
    return %c0_i32, %c0_i32_0 : i32, i32
  }
  func.func @transform_6(%arg0: i32, %arg1: i32) -> (i32, i32) {
    %c0_i32 = arith.constant 0 : i32
    %c0_i32_0 = arith.constant 0 : i32
    %c0_i32_1 = arith.constant 0 : i32
    return %c0_i32, %c0_i32_0 : i32, i32
  }
  func.func @transform_7(%arg0: i32, %arg1: i32) -> (i32, i32) {
    %c0_i32 = arith.constant 0 : i32
    %c0_i32_0 = arith.constant 0 : i32
    %c0_i32_1 = arith.constant 0 : i32
    return %c0_i32, %c0_i32_0 : i32, i32
  }
  func.func @transform_8(%arg0: i32, %arg1: i32) -> (i32, i32) {
    %c0_i32 = arith.constant 0 : i32
    %c0_i32_0 = arith.constant 0 : i32
    %c0_i32_1 = arith.constant 0 : i32
    return %c0_i32, %c0_i32_0 : i32, i32
  }
  func.func @transform_9(%arg0: i32, %arg1: i32) -> (i32, i32) {
    %c0_i32 = arith.constant 0 : i32
    %c0_i32_0 = arith.constant 0 : i32
    %c0_i32_1 = arith.constant 0 : i32
    return %c0_i32, %c0_i32_0 : i32, i32
  }
  func.func @transform_10(%arg0: i32, %arg1: i32) -> (i32, i32) {
    %c0_i32 = arith.constant 0 : i32
    %c0_i32_0 = arith.constant 0 : i32
    %c0_i32_1 = arith.constant 0 : i32
    return %c0_i32, %c0_i32_0 : i32, i32
  }
  func.func @transform_11(%arg0: i32, %arg1: i32) -> (i32, i32, i32) {
    %c0_i32 = arith.constant 0 : i32
    %c0_i32_0 = arith.constant 0 : i32
    return %arg0, %c0_i32, %arg1 : i32, i32, i32
  }
  func.func @transform_12(%arg0: i32, %arg1: i32) -> (i32, i32) {
    %c0_i32 = arith.constant 0 : i32
    %c0_i32_0 = arith.constant 0 : i32
    %c0_i32_1 = arith.constant 0 : i32
    return %c0_i32, %c0_i32_0 : i32, i32
  }
  func.func @transform_13(%arg0: i32, %arg1: i32) -> (i32, i32) {
    %c0_i32 = arith.constant 0 : i32
    %c0_i32_0 = arith.constant 0 : i32
    %c0_i32_1 = arith.constant 0 : i32
    return %c0_i32, %c0_i32_0 : i32, i32
  }
  func.func @transform_14(%arg0: i32, %arg1: i32) -> (i32, i32) {
    %c0_i32 = arith.constant 0 : i32
    %c0_i32_0 = arith.constant 0 : i32
    %c0_i32_1 = arith.constant 0 : i32
    return %c0_i32, %c0_i32_0 : i32, i32
  }
  func.func @transform_15(%arg0: i32, %arg1: i32) -> (i32, i32) {
    %c0_i32 = arith.constant 0 : i32
    %c0_i32_0 = arith.constant 0 : i32
    %c0_i32_1 = arith.constant 0 : i32
    return %c0_i32, %c0_i32_0 : i32, i32
  }
  func.func @transform_16(%arg0: i32, %arg1: i32) -> (i32, i32) {
    %c0_i32 = arith.constant 0 : i32
    %c0_i32_0 = arith.constant 0 : i32
    %c0_i32_1 = arith.constant 0 : i32
    return %c0_i32, %c0_i32_0 : i32, i32
  }
  func.func @transform_17(%arg0: i32, %arg1: i32) -> (i32, i32) {
    %c0_i32 = arith.constant 0 : i32
    %c0_i32_0 = arith.constant 0 : i32
    %c0_i32_1 = arith.constant 0 : i32
    return %c0_i32, %c0_i32_0 : i32, i32
  }
  func.func @transform_18(%arg0: i32, %arg1: i32) -> (i32, i32) {
    %c0_i32 = arith.constant 0 : i32
    %c0_i32_0 = arith.constant 0 : i32
    %c0_i32_1 = arith.constant 0 : i32
    return %c0_i32, %c0_i32_0 : i32, i32
  }
  func.func @transform_19(%arg0: i32, %arg1: i32) -> (i32, i32) {
    %c0_i32 = arith.constant 0 : i32
    %c0_i32_0 = arith.constant 0 : i32
    %c0_i32_1 = arith.constant 0 : i32
    return %c0_i32, %c0_i32_0 : i32, i32
  }
  func.func @transform_20(%arg0: i32, %arg1: i32) -> (i32, i32) {
    %c0_i32 = arith.constant 0 : i32
    %c0_i32_0 = arith.constant 0 : i32
    %c0_i32_1 = arith.constant 0 : i32
    return %c0_i32, %c0_i32_0 : i32, i32
  }
  func.func @transform_21(%arg0: i32, %arg1: i32) -> (i32, i32) {
    %c0_i32 = arith.constant 0 : i32
    %c0_i32_0 = arith.constant 0 : i32
    %c0_i32_1 = arith.constant 0 : i32
    return %c0_i32, %c0_i32_0 : i32, i32
  }
  func.func @transform_22(%arg0: i32, %arg1: i32) -> (i32, i32, i32) {
    %c0_i32 = arith.constant 0 : i32
    %c0_i32_0 = arith.constant 0 : i32
    return %arg0, %c0_i32, %arg1 : i32, i32, i32
  }
  func.func @transform_23(%arg0: i32, %arg1: i32) -> (i32, i32, i32) {
    %c0_i32 = arith.constant 0 : i32
    %c0_i32_0 = arith.constant 0 : i32
    return %arg0, %c0_i32, %arg1 : i32, i32, i32
  }
}

</mosaic_0001>

<bundles_post_ra>
// kernel: tpu_custom_call.1
= control target key start
LH: loop header
LB: loop body
LE: loop exit
PB: predicated region body
PF: predicated region fallthrough
CT: control target
= control target key end

     0   :  { %s2934_s0 = inlined_call_operand.vmem [shape: bf16[2,32,256], index: 0, kind: input, shape index: {}]   ;;  %s2935_s1 = inlined_call_operand.vmem [shape: bf16[32,32], index: 1, kind: input, shape index: {}]   ;;  %s2936_s2 = inlined_call_operand.vmem [shape: f32[32,1], index: 2, kind: input, shape index: {}]   ;;  %s2937_s3 = inlined_call_operand.vmem [shape: bf16[32,32], index: 3, kind: input, shape index: {}]   ;;  %s2938_s4 = inlined_call_operand.vmem [shape: f32[32,1], index: 4, kind: input, shape index: {}]   ;;  %s2939_s5 = inlined_call_operand.vmem [shape: bf16[32,32], index: 5, kind: input, shape index: {}]   ;;  %s2940_s6 = inlined_call_operand.vmem [shape: f32[32,1], index: 6, kind: input, shape index: {}]   ;;  %s2941_s7 = inlined_call_operand.vmem [shape: bf16[32,32], index: 7, kind: input, shape index: {}]   ;;  %s2942_s8 = inlined_call_operand.vmem [shape: f32[32,1], index: 8, kind: input, shape index: {}]   ;;  %s2943_s9 = inlined_call_operand.vmem [shape: bf16[32,32], index: 9, kind: input, shape index: {}]   ;;  %s2944_s10 = inlined_call_operand.vmem [shape: f32[32,1], index: 10, kind: input, shape index: {}]   ;;  %s2945_s11 = inlined_call_operand.vmem [shape: bf16[2,32,256], index: 11, kind: input, shape index: {}]   ;;  %s2946_s12 = inlined_call_operand.vmem [shape: bf16[32,32], index: 12, kind: input, shape index: {}]   ;;  %s2947_s13 = inlined_call_operand.vmem [shape: f32[32,1], index: 13, kind: input, shape index: {}]   ;;  %s2948_s14 = inlined_call_operand.vmem [shape: bf16[32,32], index: 14, kind: input, shape index: {}]   ;;  %s2949_s15 = inlined_call_operand.vmem [shape: f32[32,1], index: 15, kind: input, shape index: {}]   ;;  %s2950_s16 = inlined_call_operand.vmem [shape: bf16[32,32], index: 16, kind: input, shape index: {}]   ;;  %s2951_s17 = inlined_call_operand.vmem [shape: f32[32,1], index: 17, kind: input, shape index: {}]   ;;  %s2952_s18 = inlined_call_operand.vmem [shape: bf16[32,32], index: 18, kind: input, shape index: {}]   ;;  %s2953_s19 = inlined_call_operand.vmem [shape: f32[32,1], index: 19, kind: input, shape index: {}]   ;;  %s2954_s20 = inlined_call_operand.vmem [shape: bf16[32,32], index: 20, kind: input, shape index: {}]   ;;  %s2955_s21 = inlined_call_operand.vmem [shape: f32[32,1], index: 21, kind: input, shape index: {}]   ;;  %s2956_s22 = inlined_call_operand.hbm [shape: f32[2,32,256], index: 22, kind: output, shape index: {0}]   ;;  %s2957_s23 = inlined_call_operand.hbm [shape: f32[2,32,256], index: 23, kind: output, shape index: {1}]  }
   0x1   :  { %2984 = sst [smem:[#allocation15_spill]] %s2934_s0 }
   0x2   :  { %2985 = sst [smem:[#allocation16_spill]] %s2935_s1 }
   0x3   :  { %2986 = sst [smem:[#allocation17_spill]] %s2936_s2 }
   0x4   :  { %2987 = sst [smem:[#allocation18_spill]] %s2937_s3 }
   0x5   :  { %2988 = sst [smem:[#allocation19_spill]] %s2938_s4 }
   0x6   :  { %2989 = sst [smem:[#allocation20_spill]] %s2939_s5 }
   0x7   :  { %2990 = sst [smem:[#allocation21_spill]] %s2940_s6 }
   0x8   :  { %2991 = sst [smem:[#allocation22_spill]] %s2941_s7 }
   0x9   :  { %2992 = sst [smem:[#allocation23_spill]] %s2942_s8 }
   0xa   :  { %2993 = sst [smem:[#allocation24_spill]] %s2943_s9 }
   0xb   :  { %2994 = sst [smem:[#allocation25_spill]] %s2954_s20 }
   0xc   :  { %2995 = sst [smem:[#allocation26_spill]] %s2956_s22 }
   0xd   :  { %2996 = sst [smem:[#allocation27_spill]] %s2957_s23 }
   0xe   :  { %29 = vsyncpa [#allocation3], 0 }
   0xf   :  { %31 = vsyncpa [#allocation3 + $0x1], 0 }
  0x10   :  { %32 = vsyncpa [#allocation5], 0 }
  0x11   :  { %34 = vsyncpa [#allocation5 + $0x1], 0  ;;  %s2494_s4 = smov 0   ;;  %s2496_s30 = smov 0  }
  0x12   :  { %s2498_s24 = smov 0   ;;  %s2500_s25 = smov 0  }
  0x13   :  { %s2502_s5 = smov 0   ;;  %s2504_s1 = smov 0  }
  0x14 LB: > { %2997 = sst [smem:[#allocation8_spill]] %s2347_s4  ;;  %s2093_s26 = sadd.s32 4294967295, %s2367_s1   ;;  %s2367_s1 = sphi %s2504_s1, %s40_s1   ;;  %s2363_s5 = sphi %s2502_s5, %s3032_s5   ;;  %s2359_s25 = sphi %s2500_s25, %s3031_s25   ;;  %s2355_s24 = sphi %s2498_s24, %s3030_s24   ;;  %s2351_s30 = sphi %s2496_s30, %s3034_s30   ;;  %s2347_s4 = sphi %s2494_s4, %s3033_s4  }
  0x15   : > { %2998 = sst [smem:[#allocation9_spill]] %s2355_s24  ;;  %s2094_s2 = sadd.s32 4294967294, %s2367_s1  }
  0x16   : > { %2999 = sst [smem:[#allocation10_spill]] %s2363_s5  ;;  %s52_s6 = sadd.s32 1, %s2363_s5 }
  0x17   : > { %3000 = sst [smem:[#allocation11_spill]] %s2367_s1  ;;  %s537_s27 = sadd.s32 1, %s2355_s24 }
  0x18   : > { %p54_p0 = scmp.ge.s32.totalorder %s52_s6, 2  ;;  %p547_p1 = scmp.ne.s32.totalorder %s2355_s24, %s2351_s30 }
  0x19   : > { %p548_p2 = scmp.eq.s32.totalorder %s2093_s26, 1  ;;  %p553_p3 = scmp.ne.s32.totalorder %s2351_s30, %s2347_s4 }
  0x1a   : > { %s3036_s6 = smov (%p54_p0, %s52_s6), 0  ;;  %p554_p5 = scmp.eq.s32.totalorder %s2094_s2, 1 }
  0x1b   : > { %3001 = sst [smem:[#allocation12_spill]] %s3036_s6  ;;  %p2534_p4 = por %p548_p2, %p547_p1 }
  0x1c   : > { %s532_s28 = ssub.s32 %s2363_s5, %s3036_s6  ;;  %p2097_p6 = scmp.ge.s32.totalorder %s2367_s1, 1 }
  0x1d   : > { %p535_p7 = scmp.eq.s32.totalorder %s532_s28, 0  ;;  %p2541_p8 = por %p554_p5, %p553_p3 }
  0x1e   : > { %p686_p9 = scmp.lt.s32.totalorder %s2367_s1, 3 }
  0x1f   : > { %s3003_s29 = scalar_select %p2541_p8, 1, 0 }
  0x20   : > { %s2547_s3 = scalar_select %p535_p7, %s2355_s24, %s537_s27  }
  0x21   : > { %3004 = sst [smem:[#allocation13_spill]] %s3003_s29  ;;  %p687_p10 = pnand %p2097_p6, %p686_p9 }
  0x22   : > { %3005 = sst [smem:[#allocation14_spill]] %s2547_s3  ;;  %p769_p11 = scmp.lt.s32.totalorder (!%p687_p10), %s2359_s25, 1 }
  0x23   : > { %690 = sbr.rel (%p687_p10) target bundleno = 1839 (0x72f), region = 108  ;;  %s3006_s2 = sld [smem:[#allocation17_spill]] (!%p687_p10) }
  0x24   : > { %s3007_s1 = sld [smem:[#allocation15_spill]] (!%p687_p10)  ;;  %s2980_s22 = sshll.u32 (!%p687_p10), %s2359_s25, 10 }
  0x25   : > { %s3008_s27 = sld [smem:[#allocation19_spill]] (!%p687_p10)  ;;  %s2370_s5 = smov (!%p687_p10), [#allocation2]  }
  0x26   : > { %s3009_s29 = sld [smem:[#allocation16_spill]] (!%p687_p10)  ;;  %s2265_s4 = sshll.u32 (!%p687_p10), %s2370_s5, 4  ;;  %s2266_s4 = int_to_ptr.vmem [resolvable:$false] %s2265_s4 }
  0x27   : > { %s3010_s3 = sld [smem:[#allocation21_spill]] (!%p687_p10) }
  0x28   : > { %v2369_v0 = vmov 0   ;;  %s2556_s28 = scalar_select %p769_p11, %s2359_s25, 1  ;;  %vm885_vm0 = vcmask 261120   ;;  %v1379_v23 = vld [vmem:[%s2947_s13 + $0x10] sm:$0xff]  ;;  %v1380_v24 = vld [vmem:[%s2947_s13 + $0x18] sm:$0xff]  ;;  %v1377_v25 = vld [vmem:[%s2947_s13] sm:$0xff] }
  0x29   : > { %924 = vmatprep.mubr.bf16.mxu0 %v2369_v0  ;;  %2227 = vset.pattern.permute.xlu0 %v2369_v0  ;;  %v813_v1 = vld [vmem:[%s3006_s2 + $0x10] sm:$0xff]  ;;  %v811_v2 = vld [vmem:[%s3006_s2] sm:$0xff]  ;;  %v814_v3 = vld [vmem:[%s3006_s2 + $0x18] sm:$0xff]  ;;  %s3011_s8 = sld [smem:[#allocation23_spill]] }
  0x2a   : > { %847 = vperm.xlu0 %2227, %v813_v1   ;;  %2228 = vset.pattern.permute.xlu1 %v2369_v0  ;;  %s2160_s0 = sshll.u32 %s2556_s28, 5  ;;  %v812_v4 = vld [vmem:[%s3006_s2 + $0x8] sm:$0xff]  ;;  %v1383_v27 = vld [vmem:[%s2949_s15 + $0x10] sm:$0xff]  ;;  %v1384_v28 = vld [vmem:[%s2949_s15 + $0x18] sm:$0xff]  ;;  %s3016_s9 = sld [smem:[#allocation24_spill]] }
  0x2b   : > { %837 = vperm.xlu1 %2228, %v811_v2   ;;  %1025 = vmatprep.mubr.bf16.mxu1 %v2369_v0  ;;  %s776_s23 = scalar_lea.vmem %s3007_s1, %s2160_s0  ;;  %v817_v5 = vld [vmem:[%s3008_s27 + $0x10] sm:$0xff]  ;;  %v818_v9 = vld [vmem:[%s3008_s27 + $0x18] sm:$0xff]  ;;  %v815_v11 = vld [vmem:[%s3008_s27] sm:$0xff]  ;;  %s2612_s24 = scalar_lea.vmem %s2945_s11, %s2160_s0 }
  0x2c   : > { %v2229_v6 = vld [vmem:[%s776_s23 + $0x14] ss:$8 sps:$4 sm:$0xff]   ;;  %v2231_v7 = vld [vmem:[%s776_s23 + $0x10] ss:$8 sps:$4 sm:$0xff]   ;;  %v2232_v8 = vld [vmem:[%s776_s23 + $0x4] ss:$8 sps:$4 sm:$0xff]  }
  0x2d   : > { %904 = vmatprep.subr.bf16.mxu0 %v2229_v6  ;;  %v2234_v10 = vld [vmem:[%s776_s23] ss:$8 sps:$4 sm:$0xff]   ;;  %v821_v14 = vld [vmem:[%s3010_s3 + $0x10] sm:$0xff]  ;;  %v822_v15 = vld [vmem:[%s3010_s3 + $0x18] sm:$0xff]  ;;  %s3013_s1 = sld [smem:[#allocation20_spill]] }
  0x2e   : > { %852 = vperm.xlu0 %2227, %v814_v3   ;;  %905 = vmatpush1.bf16.msra.mxu0 %v2231_v7  ;;  %v2235_v12 = vld [vmem:[%s3009_s29] sm:$0xff]   ;;  %v816_v13 = vld [vmem:[%s3008_s27 + $0x8] sm:$0xff]  ;;  %v1387_v31 = vld [vmem:[%s2951_s17 + $0x10] sm:$0xff]  ;;  %s3012_s27 = sld [smem:[#allocation18_spill]] }
  0x2f   : > { %842 = vperm.xlu1 %2228, %v812_v4   ;;  %906 = vmatprep.subr.bf16.mxu0 %v2232_v8  ;;  %v819_v16 = vld [vmem:[%s3010_s3] sm:$0xff]  ;;  %v2236_v17 = vld [vmem:[%s3009_s29 + $0x8] sm:$0xff]   ;;  %v825_v19 = vld [vmem:[%s3011_s8 + $0x10] sm:$0xff]  ;;  %s3015_s0 = sld [smem:[#allocation22_spill]] }
  0x30   : > { %v820_v18 = vld [vmem:[%s3010_s3 + $0x8] sm:$0xff]  ;;  %v826_v20 = vld [vmem:[%s3011_s8 + $0x18] sm:$0xff]  ;;  %v823_v21 = vld [vmem:[%s3011_s8] sm:$0xff]  ;;  %s3017_s23 = sld [smem:[#allocation25_spill]] }
  0x31   : > { %v824_v22 = vld [vmem:[%s3011_s8 + $0x8] sm:$0xff]  ;;  %v1381_v29 = vld [vmem:[%s2949_s15] sm:$0xff]  ;;  %v1388_v32 = vld [vmem:[%s2951_s17 + $0x18] sm:$0xff]  ;;  %s3018_s3 = sld [smem:[#allocation26_spill]] }
  0x32   : > { %969 = vperm.xlu0 %2227, %v817_v5   ;;  %907 = vmatpush1.bf16.msra.mxu0 %v2234_v10  ;;  %v1378_v26 = vld [vmem:[%s2947_s13 + $0x8] sm:$0xff]  ;;  %v1385_v33 = vld [vmem:[%s2951_s17] sm:$0xff]  ;;  %v1391_v35 = vld [vmem:[%s2953_s19 + $0x10] sm:$0xff] }
  0x33   : > { %974 = vperm.xlu1 %2228, %v818_v9   ;;  %v1382_v30 = vld [vmem:[%s2949_s15 + $0x8] sm:$0xff]  ;;  %v1392_v36 = vld [vmem:[%s2953_s19 + $0x18] sm:$0xff]  ;;  %v1389_v37 = vld [vmem:[%s2953_s19] sm:$0xff]  ;;  %s3014_s26 = smov %s3013_s1 }
  0x34   : > { %v1386_v34 = vld [vmem:[%s2951_s17 + $0x8] sm:$0xff]  ;;  %v827_v39 = vld [vmem:[%s2944_s10] sm:$0xff]  ;;  %v829_v41 = vld [vmem:[%s2944_s10 + $0x10] sm:$0xff] }
  0x35   : > { %2110 = vmatmul.mubr.msk.bf16.vlgmr.msra.gmra.mxu0 %vm885_vm0, %v2235_v12  ;;  %v1390_v38 = vld [vmem:[%s2953_s19 + $0x8] sm:$0xff]  ;;  %v830_v42 = vld [vmem:[%s2944_s10 + $0x18] sm:$0xff]  ;;  %v1393_v43 = vld [vmem:[%s2955_s21] sm:$0xff] }
  0x36   : > { %959 = vperm.xlu0 %2227, %v815_v11   ;;  %934 = vmatprep.mubr.bf16.mxu0 %v2369_v0  ;;  %v828_v40 = vld [vmem:[%s2944_s10 + $0x8] sm:$0xff]  ;;  %v1395_v45 = vld [vmem:[%s2955_s21 + $0x10] sm:$0xff]  ;;  %v1396_v46 = vld [vmem:[%s2955_s21 + $0x18] sm:$0xff] }
  0x37   : > { %964 = vperm.xlu1 %2228, %v816_v13   ;;  %v1394_v44 = vld [vmem:[%s2955_s21 + $0x8] sm:$0xff]  ;;  %s2847_s8 = scalar_lea.hbm %s3018_s3, %s2980_s22 }
  0x3a   : > { %1070 = vperm.xlu0 %2227, %v821_v14  }
  0x3b   : > { %1075 = vperm.xlu1 %2228, %v822_v15  }
  0x3d   : > { %2111 = vmatmul.mubr.msk.bf16.gmra.mxu0 %vm885_vm0, %v2236_v17  ;;  %v2238_v17 = vld [vmem:[%s3012_s27 + $0x8] sm:$0xff]  }
  0x3e   : > { %1060 = vperm.xlu0 %2227, %v819_v16   ;;  %1126 = vmatprep.mubr.bf16.mxu0 %v2369_v0  ;;  %v2237_v16 = vld [vmem:[%s3012_s27] sm:$0xff]  }
  0x3f   : > { %1065 = vperm.xlu1 %2228, %v820_v18  }
  0x42   : > { %1171 = vperm.xlu0 %2227, %v825_v19  }
  0x43   : > { %1176 = vperm.xlu1 %2228, %v826_v20  }
  0x46   : > { %1161 = vperm.xlu0 %2227, %v823_v21  }
  0x47   : > { %1166 = vperm.xlu1 %2228, %v824_v22  }
  0x4a   : > { %1413 = vperm.xlu0 %2227, %v1379_v23  }
  0x4b   : > { %1418 = vperm.xlu1 %2228, %v1380_v24  }
  0x4e   : > { %1403 = vperm.xlu0 %2227, %v1377_v25  }
  0x4f   : > { %1408 = vperm.xlu1 %2228, %v1378_v26  }
  0x52   : > { %1534 = vperm.xlu0 %2227, %v1383_v27  }
  0x53   : > { %1539 = vperm.xlu1 %2228, %v1384_v28  }
  0x56   : > { %1524 = vperm.xlu0 %2227, %v1381_v29  }
  0x57   : > { %1529 = vperm.xlu1 %2228, %v1382_v30  }
  0x5a   : > { %1635 = vperm.xlu0 %2227, %v1387_v31  }
  0x5b   : > { %1640 = vperm.xlu1 %2228, %v1388_v32  }
  0x5e   : > { %1625 = vperm.xlu0 %2227, %v1385_v33  }
  0x5f   : > { %1630 = vperm.xlu1 %2228, %v1386_v34  }
  0x62   : > { %1736 = vperm.xlu0 %2227, %v1391_v35  }
  0x63   : > { %1741 = vperm.xlu1 %2228, %v1392_v36  }
  0x66   : > { %1726 = vperm.xlu0 %2227, %v1389_v37  }
  0x67   : > { %1731 = vperm.xlu1 %2228, %v1390_v38  }
  0x6a   : > { %1262 = vperm.xlu0 %2227, %v827_v39  }
  0x6b   : > { %1267 = vperm.xlu1 %2228, %v828_v40  }
  0x6e   : > { %1272 = vperm.xlu0 %2227, %v829_v41  }
  0x6f   : > { %1277 = vperm.xlu1 %2228, %v830_v42  }
  0x72   : > { %1827 = vperm.xlu0 %2227, %v1393_v43  }
  0x73   : > { %1832 = vperm.xlu1 %2228, %v1394_v44  }
  0x76   : > { %1837 = vperm.xlu0 %2227, %v1395_v45  }
  0x77   : > { %1842 = vperm.xlu1 %2228, %v1396_v46  }
  0xa5   : > { %v848_v50 = vpop.permute.xlu0 %847 }
  0xa6   : > { %v838_v51 = vpop.permute.xlu1 %837 }
  0xa9   : > { %v853_v55 = vpop.permute.xlu0 %852 }
  0xaa   : > { %v843_v56 = vpop.permute.xlu1 %842 }
  0xad   : > { %v970_v23 = vpop.permute.xlu0 %969 }
  0xae   : > { %v975_v21 = vpop.permute.xlu1 %974 }
  0xb1   : > { %v960_v31 = vpop.permute.xlu0 %959 }
  0xb2   : > { %v965_v26 = vpop.permute.xlu1 %964 }
  0xf5   : > { %v926_v47 = vpop.f32.mrf.mxu0 }
  0xf6   : > { %v927_v7 = vadd.f32 %v926_v47, %v838_v51 }
  0xf7   : > { %v928_v48 = vpop.f32.mrf.mxu0 }
  0xf8   : > { %v929_v63 = vadd.f32 %v928_v48, %v838_v51  ;;  %v945_v14 = vmax.f32 %v927_v7, 0.0  ;;  %v2240_v51 = vld [vmem:[%s3014_s26 + $0x8] sm:$0xff]  }
  0xf9   : > { %v930_v49 = vpop.f32.mrf.mxu0 }
  0xfa   : > { %v931_v2 = vadd.f32 %v930_v49, %v843_v56  ;;  %v946_v9 = vmax.f32 %v929_v63, 0.0 }
  0xfb   : > { %v932_v52 = vpop.f32.mrf.mxu0 }
  0xfc   : > { %v933_v58 = vadd.f32 %v932_v52, %v843_v56  ;;  %v947_v11 = vmax.f32 %v931_v2, 0.0 }
  0xfd   : > { %v936_v53 = vpop.f32.mrf.mxu0 }
  0xfe   : > { %v937_v61 = vadd.f32 %v936_v53, %v848_v50  ;;  %v948_v4 = vmax.f32 %v933_v58, 0.0  ;;  %v953_v15 = vpack.c.bf16 %v947_v11, %v945_v14 }
  0xff   : > { %v938_v54 = vpop.f32.mrf.mxu0 }
 0x100   : > { %v939_v59 = vadd.f32 %v938_v54, %v848_v50  ;;  %v949_v8 = vmax.f32 %v937_v61, 0.0  ;;  %v954_v13 = vpack.c.bf16 %v948_v4, %v946_v9  ;;  %v2239_v50 = vld [vmem:[%s3013_s1] sm:$0xff]   ;;  %s2779_s1 = sand.u32 1, %s2351_s30  }
 0x101   : > { %v940_v57 = vpop.f32.mrf.mxu0 }
 0x102   : > { %v941_v60 = vadd.f32 %v940_v57, %v853_v55  ;;  %v950_v5 = vmax.f32 %v939_v59, 0.0  ;;  %v1071_v57 = vpop.permute.xlu0 %1070 }
 0x103   : > { %v942_v62 = vpop.f32.mrf.mxu0 }
 0x104   : > { %v943_v1 = vadd.f32 %v942_v62, %v853_v55  ;;  %v951_v3 = vmax.f32 %v941_v60, 0.0  ;;  %v1076_v55 = vpop.permute.xlu1 %1075 }
 0x106   : > { %v952_v6 = vmax.f32 %v943_v1, 0.0  ;;  %v955_v12 = vpack.c.bf16 %v951_v3, %v949_v8  ;;  %v1061_v2 = vpop.permute.xlu0 %1060 }
 0x108   : > { %v956_v10 = vpack.c.bf16 %v952_v6, %v950_v5  ;;  %v1066_v60 = vpop.permute.xlu1 %1065 }
 0x10a   : > { %1005 = vmatprep.subr.bf16.mxu1 %v956_v10 }
 0x10b   : > { %1006 = vmatpush1.bf16.msra.mxu1 %v955_v12 }
 0x10c   : > { %1007 = vmatprep.subr.bf16.mxu1 %v954_v13 }
 0x10f   : > { %1008 = vmatpush1.bf16.msra.mxu1 %v953_v15 }
 0x112   : > { %2114 = vmatmul.mubr.msk.bf16.vlgmr.msra.gmra.mxu1 %vm885_vm0, %v2237_v16 }
 0x113   : > { %1035 = vmatprep.mubr.bf16.mxu1 %v2369_v0 }
 0x11a   : > { %2115 = vmatmul.mubr.msk.bf16.gmra.mxu1 %vm885_vm0, %v2238_v17 }
 0x11b   : > { %1227 = vmatprep.mubr.bf16.mxu1 %v2369_v0 }
 0x1d2   : > { %v1027_v18 = vpop.f32.mrf.mxu1 }
 0x1d3   : > { %v1028_v41 = vadd.f32 %v1027_v18, %v960_v31 }
 0x1d4   : > { %v1029_v19 = vpop.f32.mrf.mxu1 }
 0x1d5   : > { %v1030_v34 = vadd.f32 %v1029_v19, %v960_v31  ;;  %v1046_v48 = vmax.f32 %v1028_v41, 0.0 }
 0x1d6   : > { %v1031_v20 = vpop.f32.mrf.mxu1 }
 0x1d7   : > { %v1032_v36 = vadd.f32 %v1031_v20, %v965_v26  ;;  %v1047_v43 = vmax.f32 %v1030_v34, 0.0  ;;  %v2245_v20 = vld [vmem:[%s2612_s24 + $0x14] ss:$8 sps:$4 sm:$0xff]   ;;  %v1172_v34 = vpop.permute.xlu0 %1171 }
 0x1d8   : > { %v1033_v22 = vpop.f32.mrf.mxu1 }
 0x1d9   : > { %v1034_v28 = vadd.f32 %v1033_v22, %v965_v26  ;;  %v1048_v45 = vmax.f32 %v1032_v36, 0.0  ;;  %v2241_v22 = vld [vmem:[%s3015_s0] sm:$0xff]   ;;  %v2242_v26 = vld [vmem:[%s3015_s0 + $0x8] sm:$0xff]  }
 0x1da   : > { %v1037_v24 = vpop.f32.mrf.mxu1 }
 0x1db   : > { %v1038_v32 = vadd.f32 %v1037_v24, %v970_v23  ;;  %v1049_v38 = vmax.f32 %v1034_v28, 0.0  ;;  %v1054_v49 = vpack.c.bf16 %v1048_v45, %v1046_v48  ;;  %v2248_v24 = vld [vmem:[%s2612_s24 + $0x4] ss:$8 sps:$4 sm:$0xff]  }
 0x1dc   : > { %v1039_v25 = vpop.f32.mrf.mxu1  ;;  %v2250_v28 = vld [vmem:[%s2946_s12 + $0x8] sm:$0xff]  }
 0x1dd   : > { %v1040_v29 = vadd.f32 %v1039_v25, %v970_v23  ;;  %v1050_v42 = vmax.f32 %v1038_v32, 0.0  ;;  %v1055_v47 = vpack.c.bf16 %v1049_v38, %v1047_v43  ;;  %v2243_v23 = vld [vmem:[%s2612_s24 + $0x10] ss:$8 sps:$4 sm:$0xff]   ;;  %v2246_v25 = vld [vmem:[%s2612_s24] ss:$8 sps:$4 sm:$0xff]   ;;  %v1177_v32 = vpop.permute.xlu1 %1176  ;;  %s2977_s24 = sshll.u32 %s2779_s1, 6 }
 0x1de   : > { %v1041_v27 = vpop.f32.mrf.mxu1  ;;  %s2786_s6 = scalar_lea.vmem [#allocation2], %s2977_s24 }
 0x1df   : > { %v1042_v30 = vadd.f32 %v1041_v27, %v975_v21  ;;  %v1051_v39 = vmax.f32 %v1040_v29, 0.0  ;;  %v2249_v27 = vld [vmem:[%s2946_s12] sm:$0xff]   ;;  %s1943_s2 = sshll.u32 %s2786_s6, 4  ;;  %s2849_s2 = int_to_ptr.vmem [resolvable:$true] %s1943_s2 }
 0x1e0   : > { %v1043_v33 = vpop.f32.mrf.mxu1  ;;  %s2261_s20 = scalar_lea.vmem %s2849_s2, 1024  ;;  %p2268_p1 = scmp.lt.s32.totalorder %s2849_s2, %s2266_s4 }
 0x1e1   : > { %v1044_v35 = vadd.f32 %v1043_v33, %v975_v21  ;;  %v1052_v37 = vmax.f32 %v1042_v30, 0.0  ;;  %p2262_p12 = scmp.ne.s32.totalorder %s2849_s2, %s2261_s20 }
 0x1e3   : > { %v1053_v40 = vmax.f32 %v1044_v35, 0.0  ;;  %v1056_v46 = vpack.c.bf16 %v1052_v37, %v1050_v42  ;;  %v1167_v37 = vpop.permute.xlu1 %1166  ;;  %v1162_v42 = vpop.permute.xlu0 %1161  ;;  %p2263_p13 = pnand %p2262_p12, %p2534_p4 }
 0x1e5   : > { %v1057_v44 = vpack.c.bf16 %v1053_v40, %v1051_v39  ;;  %p2264_p0 = pneg %p2263_p13 }
 0x1e7   : > { %1106 = vmatprep.subr.bf16.mxu0 %v1057_v44 }
 0x1e8   : > { %1107 = vmatpush1.bf16.msra.mxu0 %v1056_v46 }
 0x1e9   : > { %1108 = vmatprep.subr.bf16.mxu0 %v1055_v47 }
 0x1ec   : > { %1109 = vmatpush1.bf16.msra.mxu0 %v1054_v49 }
 0x1ef   : > { %2118 = vmatmul.mubr.msk.bf16.vlgmr.msra.gmra.mxu0 %vm885_vm0, %v2239_v50 }
 0x1f0   : > { %1136 = vmatprep.mubr.bf16.mxu0 %v2369_v0 }
 0x1f7   : > { %2119 = vmatmul.mubr.msk.bf16.gmra.mxu0 %vm885_vm0, %v2240_v51 }
 0x1f8   : > { %1328 = vmatprep.mubr.bf16.mxu0 %v2369_v0 }
 0x2af   : > { %v1128_v52 = vpop.f32.mrf.mxu0 }
 0x2b0   : > { %v1129_v12 = vadd.f32 %v1128_v52, %v1061_v2 }
 0x2b1   : > { %v1130_v53 = vpop.f32.mrf.mxu0 }
 0x2b2   : > { %v1131_v5 = vadd.f32 %v1130_v53, %v1061_v2  ;;  %v1147_v19 = vmax.f32 %v1129_v12, 0.0  ;;  %v1414_v2 = vpop.permute.xlu0 %1413 }
 0x2b3   : > { %v1132_v54 = vpop.f32.mrf.mxu0 }
 0x2b4   : > { %v1133_v7 = vadd.f32 %v1132_v54, %v1066_v60  ;;  %v1148_v14 = vmax.f32 %v1131_v5, 0.0  ;;  %v2251_v5 = vld [vmem:[%s3016_s9] sm:$0xff]  }
 0x2b5   : > { %v1134_v56 = vpop.f32.mrf.mxu0 }
 0x2b6   : > { %v1135_v62 = vadd.f32 %v1134_v56, %v1066_v60  ;;  %v1149_v16 = vmax.f32 %v1133_v7, 0.0  ;;  %v1404_v12 = vpop.permute.xlu0 %1403 }
 0x2b7   : > { %v1138_v58 = vpop.f32.mrf.mxu0 }
 0x2b8   : > { %v1139_v3 = vadd.f32 %v1138_v58, %v1071_v57  ;;  %v1150_v9 = vmax.f32 %v1135_v62, 0.0  ;;  %v1155_v21 = vpack.c.bf16 %v1149_v16, %v1147_v19  ;;  %v1419_v62 = vpop.permute.xlu1 %1418 }
 0x2b9   : > { %v1140_v59 = vpop.f32.mrf.mxu0 }
 0x2ba   : > { %v1141_v63 = vadd.f32 %v1140_v59, %v1071_v57  ;;  %v1151_v13 = vmax.f32 %v1139_v3, 0.0  ;;  %v1156_v18 = vpack.c.bf16 %v1150_v9, %v1148_v14 }
 0x2bb   : > { %v1142_v61 = vpop.f32.mrf.mxu0 }
 0x2bc   : > { %v1143_v1 = vadd.f32 %v1142_v61, %v1076_v55  ;;  %v1152_v10 = vmax.f32 %v1141_v63, 0.0  ;;  %v1409_v7 = vpop.permute.xlu1 %1408 }
 0x2bd   : > { %v1144_v4 = vpop.f32.mrf.mxu0 }
 0x2be   : > { %v1145_v6 = vadd.f32 %v1144_v4, %v1076_v55  ;;  %v1153_v8 = vmax.f32 %v1143_v1, 0.0 }
 0x2c0   : > { %v1154_v11 = vmax.f32 %v1145_v6, 0.0  ;;  %v1157_v17 = vpack.c.bf16 %v1153_v8, %v1151_v13 }
 0x2c2   : > { %v1158_v15 = vpack.c.bf16 %v1154_v11, %v1152_v10 }
 0x2c4   : > { %1207 = vmatprep.subr.bf16.mxu1 %v1158_v15 }
 0x2c5   : > { %1208 = vmatpush1.bf16.msra.mxu1 %v1157_v17 }
 0x2c6   : > { %1209 = vmatprep.subr.bf16.mxu1 %v1156_v18 }
 0x2c9   : > { %1210 = vmatpush1.bf16.msra.mxu1 %v1155_v21 }
 0x2ca   : > { %1469 = vmatprep.subr.bf16.mxu1 %v2245_v20 }
 0x2cc   : > { %2122 = vmatmul.mubr.msk.bf16.vlgmr.msra.gmra.mxu1 %vm885_vm0, %v2241_v22  ;;  %v2252_v22 = vld [vmem:[%s3016_s9 + $0x8] sm:$0xff]  }
 0x2cd   : > { %1237 = vmatprep.mubr.bf16.mxu1 %v2369_v0  ;;  %1470 = vmatpush1.bf16.msra.mxu1 %v2243_v23 }
 0x2ce   : > { %1471 = vmatprep.subr.bf16.mxu1 %v2248_v24 }
 0x2d1   : > { %1472 = vmatpush1.bf16.msra.mxu1 %v2246_v25 }
 0x2d4   : > { %2123 = vmatmul.mubr.msk.bf16.gmra.mxu1 %vm885_vm0, %v2242_v26 }
 0x2d5   : > { %1489 = vmatprep.mubr.bf16.mxu1 %v2369_v0 }
 0x2dc   : > { %2134 = vmatmul.mubr.msk.bf16.vlgmr.msra.gmra.mxu1 %vm885_vm0, %v2249_v27 }
 0x2dd   : > { %1499 = vmatprep.mubr.bf16.mxu1 %v2369_v0 }
 0x2e4   : > { %2135 = vmatmul.mubr.msk.bf16.gmra.mxu1 %vm885_vm0, %v2250_v28 }
 0x2e5   : > { %1691 = vmatprep.mubr.bf16.mxu1 %v2369_v0 }
 0x38c   : > { %v1229_v29 = vpop.f32.mrf.mxu1 }
 0x38d   : > { %v1230_v53 = vadd.f32 %v1229_v29, %v1162_v42 }
 0x38e   : > { %v1231_v30 = vpop.f32.mrf.mxu1 }
 0x38f   : > { %v1232_v45 = vadd.f32 %v1231_v30, %v1162_v42  ;;  %v1248_v63 = vmax.f32 %v1230_v53, 0.0 }
 0x390   : > { %v1233_v31 = vpop.f32.mrf.mxu1 }
 0x391   : > { %v1234_v47 = vadd.f32 %v1233_v31, %v1167_v37  ;;  %v1249_v56 = vmax.f32 %v1232_v45, 0.0 }
 0x392   : > { %v1235_v33 = vpop.f32.mrf.mxu1 }
 0x393   : > { %v1236_v39 = vadd.f32 %v1235_v33, %v1167_v37  ;;  %v1250_v58 = vmax.f32 %v1234_v47, 0.0  ;;  %v2254_v33 = vld [vmem:[%s2948_s14 + $0x8] sm:$0xff]  }
 0x394   : > { %v1239_v35 = vpop.f32.mrf.mxu1 }
 0x395   : > { %v1240_v43 = vadd.f32 %v1239_v35, %v1172_v34  ;;  %v1251_v50 = vmax.f32 %v1236_v39, 0.0  ;;  %v1256_v3 = vpack.c.bf16 %v1250_v58, %v1248_v63  ;;  %v1540_v35 = vpop.permute.xlu1 %1539 }
 0x396   : > { %v1241_v36 = vpop.f32.mrf.mxu1 }
 0x397   : > { %v1242_v40 = vadd.f32 %v1241_v36, %v1172_v34  ;;  %v1252_v54 = vmax.f32 %v1240_v43, 0.0  ;;  %v1257_v61 = vpack.c.bf16 %v1251_v50, %v1249_v56  ;;  %v1535_v34 = vpop.permute.xlu0 %1534 }
 0x398   : > { %v1243_v38 = vpop.f32.mrf.mxu1 }
 0x399   : > { %v1244_v41 = vadd.f32 %v1243_v38, %v1177_v32  ;;  %v1253_v51 = vmax.f32 %v1242_v40, 0.0  ;;  %v1530_v37 = vpop.permute.xlu1 %1529 }
 0x39a   : > { %v1245_v44 = vpop.f32.mrf.mxu1 }
 0x39b   : > { %v1246_v46 = vadd.f32 %v1245_v44, %v1177_v32  ;;  %v1254_v48 = vmax.f32 %v1244_v41, 0.0  ;;  %v2253_v32 = vld [vmem:[%s2948_s14] sm:$0xff]   ;;  %v1525_v36 = vpop.permute.xlu0 %1524 }
 0x39c   : > { %v1491_v49 = vpop.f32.mrf.mxu1 }
 0x39d   : > { %v1255_v52 = vmax.f32 %v1246_v46, 0.0  ;;  %v1258_v59 = vpack.c.bf16 %v1254_v48, %v1252_v54  ;;  %v1492_v23 = vadd.f32 %v1491_v49, %v1404_v12  ;;  %v2766_v39 = vpop.permute.xlu1 %1640 }
 0x39e   : > { %v1493_v55 = vpop.f32.mrf.mxu1 }
 0x39f   : > { %v1259_v57 = vpack.c.bf16 %v1255_v52, %v1253_v51  ;;  %v1494_v15 = vadd.f32 %v1493_v55, %v1404_v12  ;;  %v1510_v30 = vmax.f32 %v1492_v23, 0.0  ;;  %v2764_v38 = vpop.permute.xlu0 %1635 }
 0x3a0   : > { %v1495_v60 = vpop.f32.mrf.mxu1 }
 0x3a1   : > { %1308 = vmatprep.subr.bf16.mxu0 %v1259_v57  ;;  %v1496_v17 = vadd.f32 %v1495_v60, %v1409_v7  ;;  %v1511_v25 = vmax.f32 %v1494_v15, 0.0  ;;  %v2770_v41 = vpop.permute.xlu1 %1630 }
 0x3a2   : > { %1309 = vmatpush1.bf16.msra.mxu0 %v1258_v59  ;;  %v1497_v1 = vpop.f32.mrf.mxu1 }
 0x3a3   : > { %1310 = vmatprep.subr.bf16.mxu0 %v1257_v61  ;;  %v1498_v9 = vadd.f32 %v1497_v1, %v1409_v7  ;;  %v1512_v27 = vmax.f32 %v1496_v17, 0.0  ;;  %v2768_v40 = vpop.permute.xlu0 %1625 }
 0x3a4   : > { %v1501_v4 = vpop.f32.mrf.mxu1 }
 0x3a5   : > { %v1502_v13 = vadd.f32 %v1501_v4, %v1414_v2  ;;  %v1513_v19 = vmax.f32 %v1498_v9, 0.0  ;;  %v1518_v31 = vpack.c.bf16 %v1512_v27, %v1510_v30  ;;  %v2774_v43 = vpop.permute.xlu1 %1741 }
 0x3a6   : > { %1311 = vmatpush1.bf16.msra.mxu0 %v1256_v3  ;;  %v1503_v6 = vpop.f32.mrf.mxu1 }
 0x3a7   : > { %v1504_v10 = vadd.f32 %v1503_v6, %v1414_v2  ;;  %v1514_v24 = vmax.f32 %v1502_v13, 0.0  ;;  %v1519_v29 = vpack.c.bf16 %v1513_v19, %v1511_v25  ;;  %v2772_v42 = vpop.permute.xlu0 %1736 }
 0x3a8   : > { %v1505_v8 = vpop.f32.mrf.mxu1 }
 0x3a9   : > { %v1506_v11 = vadd.f32 %v1505_v8, %v1419_v62  ;;  %2126 = vmatmul.mubr.msk.bf16.vlgmr.msra.gmra.mxu0 %vm885_vm0, %v2251_v5  ;;  %v1515_v20 = vmax.f32 %v1504_v10, 0.0  ;;  %v2782_v45 = vpop.permute.xlu1 %1731 }
 0x3aa   : > { %v1507_v14 = vpop.f32.mrf.mxu1  ;;  %1338 = vmatprep.mubr.bf16.mxu0 %v2369_v0 }
 0x3ab   : > { %v1508_v16 = vadd.f32 %v1507_v14, %v1419_v62  ;;  %v1516_v18 = vmax.f32 %v1506_v11, 0.0  ;;  %v2776_v44 = vpop.permute.xlu0 %1726 }
 0x3ad   : > { %v1517_v21 = vmax.f32 %v1508_v16, 0.0  ;;  %v1520_v28 = vpack.c.bf16 %v1516_v18, %v1514_v24  ;;  %v1268_v51 = vpop.permute.xlu1 %1267 }
 0x3af   : > { %v1521_v26 = vpack.c.bf16 %v1517_v21, %v1515_v20  ;;  %v1263_v46 = vpop.permute.xlu0 %1262 }
 0x3b1   : > { %2127 = vmatmul.mubr.msk.bf16.gmra.mxu0 %vm885_vm0, %v2252_v22  ;;  %1570 = vmatprep.subr.bf16.mxu0 %v1521_v26  ;;  %v1278_v61 = vpop.permute.xlu1 %1277 }
 0x3b2   : > { %1571 = vmatpush1.bf16.msra.mxu0 %v1520_v28  ;;  %1590 = vmatprep.mubr.bf16.mxu0 %v2369_v0 }
 0x3b3   : > { %1572 = vmatprep.subr.bf16.mxu0 %v1519_v29  ;;  %v1273_v56 = vpop.permute.xlu0 %1272 }
 0x3b6   : > { %1573 = vmatpush1.bf16.msra.mxu0 %v1518_v31  ;;  %v2255_v31 = vld [vmem:[%s2950_s16] sm:$0xff]  }
 0x3b9   : > { %2138 = vmatmul.mubr.msk.bf16.vlgmr.msra.gmra.mxu0 %vm885_vm0, %v2253_v32  ;;  %v2256_v32 = vld [vmem:[%s2950_s16 + $0x8] sm:$0xff]  }
 0x3ba   : > { %1600 = vmatprep.mubr.bf16.mxu0 %v2369_v0 }
 0x3c1   : > { %2139 = vmatmul.mubr.msk.bf16.gmra.mxu0 %vm885_vm0, %v2254_v33 }
 0x3c2   : > { %1792 = vmatprep.mubr.bf16.mxu0 %v2369_v0 }
 0x469   : > { %v1330_v47 = vpop.f32.mrf.mxu0 }
 0x46a   : > { %v1331_v48 = vadd.f32 %v1330_v47, %v1263_v46 }
 0x46b   : > { %v1332_v49 = vpop.f32.mrf.mxu0 }
 0x46c   : > { %1349 = vst [vmem:[%s2786_s6] sm:$0xff] %v1331_v48  ;;  %v1333_v50 = vadd.f32 %v1332_v49, %v1263_v46 }
 0x46d   : > { %v1334_v52 = vpop.f32.mrf.mxu0 }
 0x46e   : > { %1350 = vst [vmem:[%s2786_s6 + $0x8] sm:$0xff] %v1333_v50  ;;  %v1335_v53 = vadd.f32 %v1334_v52, %v1268_v51 }
 0x46f   : > { %v1336_v54 = vpop.f32.mrf.mxu0 }
 0x470   : > { %1351 = vst [vmem:[%s2786_s6 + $0x10] sm:$0xff] %v1335_v53  ;;  %v1337_v55 = vadd.f32 %v1336_v54, %v1268_v51 }
 0x471   : > { %v1340_v57 = vpop.f32.mrf.mxu0 }
 0x472   : > { %1352 = vst [vmem:[%s2786_s6 + $0x18] sm:$0xff] %v1337_v55  ;;  %v1341_v58 = vadd.f32 %v1340_v57, %v1273_v56 }
 0x473   : > { %v1342_v59 = vpop.f32.mrf.mxu0 }
 0x474   : > { %1353 = vst [vmem:[%s2786_s6 + $0x20] sm:$0xff] %v1341_v58  ;;  %v1343_v60 = vadd.f32 %v1342_v59, %v1273_v56 }
 0x475   : > { %v1344_v62 = vpop.f32.mrf.mxu0 }
 0x476   : > { %1354 = vst [vmem:[%s2786_s6 + $0x28] sm:$0xff] %v1343_v60  ;;  %v1345_v63 = vadd.f32 %v1344_v62, %v1278_v61 }
 0x477   : > { %v1346_v1 = vpop.f32.mrf.mxu0 }
 0x478   : > { %1355 = vst [vmem:[%s2786_s6 + $0x30] sm:$0xff] %v1345_v63  ;;  %v1347_v2 = vadd.f32 %v1346_v1, %v1278_v61 }
 0x479   : > { %v1592_v3 = vpop.f32.mrf.mxu0 }
 0x47a   : > { %1356 = vst [vmem:[%s2786_s6 + $0x38] sm:$0xff] %v1347_v2  ;;  %v1593_v22 = vadd.f32 %v1592_v3, %v1525_v36  ;;  %s2267_s6 = scalar_lea.vmem %s2266_s4, 2048 }
 0x47b   : > { %v1594_v4 = vpop.f32.mrf.mxu0  ;;  %p2269_p2 = scmp.lt.s32.totalorder %s2267_s6, %s2261_s20 }
 0x47c   : > { %v1595_v15 = vadd.f32 %v1594_v4, %v1525_v36  ;;  %v1611_v29 = vmax.f32 %v1593_v22, 0.0 }
 0x47d   : > { %v1596_v5 = vpop.f32.mrf.mxu0  ;;  %p2270_p3 = por %p2269_p2, %p2268_p1 }
 0x47e   : > { %v1597_v17 = vadd.f32 %v1596_v5, %v1530_v37  ;;  %v1612_v24 = vmax.f32 %v1595_v15, 0.0 }
 0x47f   : > { %v1598_v6 = vpop.f32.mrf.mxu0  ;;  %p2271_p5 = pnand %p2270_p3, %p2264_p0 }
 0x480   : > { %v1599_v10 = vadd.f32 %v1598_v6, %v1530_v37  ;;  %v1613_v26 = vmax.f32 %v1597_v17, 0.0 }
 0x481   : > { %v1602_v7 = vpop.f32.mrf.mxu0 }
 0x482   : > { %v1603_v13 = vadd.f32 %v1602_v7, %v1535_v34  ;;  %v1614_v19 = vmax.f32 %v1599_v10, 0.0  ;;  %v1619_v30 = vpack.c.bf16 %v1613_v26, %v1611_v29  ;;  %v2260_v29 = vld [vmem:[%s3017_s23 + $0x8] sm:$0xff]  }
 0x483   : > { %v1604_v8 = vpop.f32.mrf.mxu0 }
 0x484   : > { %v1605_v11 = vadd.f32 %v1604_v8, %v1535_v34  ;;  %v1615_v23 = vmax.f32 %v1603_v13, 0.0  ;;  %v1620_v28 = vpack.c.bf16 %v1614_v19, %v1612_v24 }
 0x485   : > { %v1606_v9 = vpop.f32.mrf.mxu0 }
 0x486   : > { %v1607_v12 = vadd.f32 %v1606_v9, %v1540_v35  ;;  %v1616_v20 = vmax.f32 %v1605_v11, 0.0 }
 0x487   : > { %v1608_v14 = vpop.f32.mrf.mxu0 }
 0x488   : > { %v1609_v16 = vadd.f32 %v1608_v14, %v1540_v35  ;;  %v1617_v18 = vmax.f32 %v1607_v12, 0.0 }
 0x48a   : > { %v1618_v21 = vmax.f32 %v1609_v16, 0.0  ;;  %v1621_v27 = vpack.c.bf16 %v1617_v18, %v1615_v23 }
 0x48c   : > { %v1622_v25 = vpack.c.bf16 %v1618_v21, %v1616_v20 }
 0x48e   : > { %1671 = vmatprep.subr.bf16.mxu1 %v1622_v25 }
 0x48f   : > { %1672 = vmatpush1.bf16.msra.mxu1 %v1621_v27 }
 0x490   : > { %1673 = vmatprep.subr.bf16.mxu1 %v1620_v28 }
 0x493   : > { %1674 = vmatpush1.bf16.msra.mxu1 %v1619_v30 }
 0x496   : > { %2142 = vmatmul.mubr.msk.bf16.vlgmr.msra.gmra.mxu1 %vm885_vm0, %v2255_v31 }
 0x497   : > { %1701 = vmatprep.mubr.bf16.mxu1 %v2369_v0 }
 0x49e   : > { %2143 = vmatmul.mubr.msk.bf16.gmra.mxu1 %vm885_vm0, %v2256_v32 }
 0x49f   : > { %1893 = vmatprep.mubr.bf16.mxu1 %v2369_v0 }
 0x556   : > { %v1693_v33 = vpop.f32.mrf.mxu1 }
 0x557   : > { %v1694_v60 = vadd.f32 %v1693_v33, %v2768_v40 }
 0x558   : > { %v1695_v34 = vpop.f32.mrf.mxu1 }
 0x559   : > { %v1696_v53 = vadd.f32 %v1695_v34, %v2768_v40  ;;  %v2258_v40 = vld [vmem:[%s2952_s18 + $0x8] sm:$0xff]  }
 0x55a   : > { %v1697_v35 = vpop.f32.mrf.mxu1 }
 0x55b   : > { %v1698_v55 = vadd.f32 %v1697_v35, %v2770_v41  ;;  %v1713_v62 = vmax.f32 %v1696_v53, 0.0 }
 0x55c   : > { %v1699_v36 = vpop.f32.mrf.mxu1 }
 0x55d   : > { %v1700_v48 = vadd.f32 %v1699_v36, %v2770_v41  ;;  %v1714_v1 = vmax.f32 %v1698_v55, 0.0 }
 0x55e   : > { %v1703_v37 = vpop.f32.mrf.mxu1 }
 0x55f   : > { %v1704_v51 = vadd.f32 %v1703_v37, %v2764_v38  ;;  %v1715_v57 = vmax.f32 %v1700_v48, 0.0 }
 0x560   : > { %v1705_v46 = vpop.f32.mrf.mxu1 }
 0x561   : > { %v1706_v49 = vadd.f32 %v1705_v46, %v2764_v38  ;;  %v1716_v61 = vmax.f32 %v1704_v51, 0.0  ;;  %v1721_v3 = vpack.c.bf16 %v1715_v57, %v1713_v62  ;;  %v1712_v38 = vmax.f32 %v1694_v60, 0.0 }
 0x562   : > { %v1707_v47 = vpop.f32.mrf.mxu1 }
 0x563   : > { %v1708_v50 = vadd.f32 %v1707_v47, %v2766_v39  ;;  %v1717_v58 = vmax.f32 %v1706_v49, 0.0  ;;  %v1720_v4 = vpack.c.bf16 %v1714_v1, %v1712_v38 }
 0x564   : > { %v1709_v52 = vpop.f32.mrf.mxu1 }
 0x565   : > { %v1710_v54 = vadd.f32 %v1709_v52, %v2766_v39  ;;  %v1718_v56 = vmax.f32 %v1708_v50, 0.0  ;;  %v2257_v39 = vld [vmem:[%s2952_s18] sm:$0xff]  }
 0x567   : > { %v1719_v59 = vmax.f32 %v1710_v54, 0.0  ;;  %v1722_v2 = vpack.c.bf16 %v1718_v56, %v1716_v61 }
 0x569   : > { %v1723_v63 = vpack.c.bf16 %v1719_v59, %v1717_v58 }
 0x56b   : > { %1772 = vmatprep.subr.bf16.mxu0 %v1723_v63 }
 0x56c   : > { %1773 = vmatpush1.bf16.msra.mxu0 %v1722_v2 }
 0x56d   : > { %1774 = vmatprep.subr.bf16.mxu0 %v1721_v3 }
 0x570   : > { %1775 = vmatpush1.bf16.msra.mxu0 %v1720_v4 }
 0x573   : > { %2146 = vmatmul.mubr.msk.bf16.vlgmr.msra.gmra.mxu0 %vm885_vm0, %v2257_v39 }
 0x574   : > { %1802 = vmatprep.mubr.bf16.mxu0 %v2369_v0 }
 0x57b   : > { %2147 = vmatmul.mubr.msk.bf16.gmra.mxu0 %vm885_vm0, %v2258_v40 }
 0x633   : > { %v1794_v41 = vpop.f32.mrf.mxu0 }
 0x634   : > { %v1795_v23 = vadd.f32 %v1794_v41, %v2776_v44 }
 0x635   : > { %v1796_v5 = vpop.f32.mrf.mxu0 }
 0x636   : > { %v1797_v16 = vadd.f32 %v1796_v5, %v2776_v44  ;;  %v2259_v44 = vld [vmem:[%s3017_s23] sm:$0xff]  }
 0x637   : > { %v1798_v6 = vpop.f32.mrf.mxu0 }
 0x638   : > { %v1799_v18 = vadd.f32 %v1798_v6, %v2782_v45  ;;  %v1814_v25 = vmax.f32 %v1797_v16, 0.0 }
 0x639   : > { %v1800_v7 = vpop.f32.mrf.mxu0 }
 0x63a   : > { %v1801_v11 = vadd.f32 %v1800_v7, %v2782_v45  ;;  %v1815_v27 = vmax.f32 %v1799_v18, 0.0 }
 0x63b   : > { %v1804_v8 = vpop.f32.mrf.mxu0 }
 0x63c   : > { %v1805_v14 = vadd.f32 %v1804_v8, %v2772_v42  ;;  %v1816_v20 = vmax.f32 %v1801_v11, 0.0 }
 0x63d   : > { %v1806_v9 = vpop.f32.mrf.mxu0 }
 0x63e   : > { %v1807_v12 = vadd.f32 %v1806_v9, %v2772_v42  ;;  %v1817_v24 = vmax.f32 %v1805_v14, 0.0  ;;  %v1822_v28 = vpack.c.bf16 %v1816_v20, %v1814_v25 }
 0x63f   : > { %v1808_v10 = vpop.f32.mrf.mxu0 }
 0x640   : > { %v1809_v13 = vadd.f32 %v1808_v10, %v2774_v43  ;;  %v1818_v21 = vmax.f32 %v1807_v12, 0.0 }
 0x641   : > { %v1810_v15 = vpop.f32.mrf.mxu0 }
 0x642   : > { %v1811_v17 = vadd.f32 %v1810_v15, %v2774_v43  ;;  %v1819_v19 = vmax.f32 %v1809_v13, 0.0  ;;  %v1813_v43 = vmax.f32 %v1795_v23, 0.0 }
 0x644   : > { %v1820_v22 = vmax.f32 %v1811_v17, 0.0  ;;  %v1823_v42 = vpack.c.bf16 %v1819_v19, %v1817_v24  ;;  %v1821_v45 = vpack.c.bf16 %v1815_v27, %v1813_v43 }
 0x646   : > { %v1824_v26 = vpack.c.bf16 %v1820_v22, %v1818_v21 }
 0x648   : > { %1873 = vmatprep.subr.bf16.mxu1 %v1824_v26 }
 0x649   : > { %1874 = vmatpush1.bf16.msra.mxu1 %v1823_v42 }
 0x64a   : > { %1875 = vmatprep.subr.bf16.mxu1 %v1822_v28 }
 0x64d   : > { %1876 = vmatpush1.bf16.msra.mxu1 %v1821_v45 }
 0x650   : > { %2150 = vmatmul.mubr.msk.bf16.vlgmr.msra.gmra.mxu1 %vm885_vm0, %v2259_v44 }
 0x651   : > { %1903 = vmatprep.mubr.bf16.mxu1 %v2369_v0 }
 0x658   : > { %2151 = vmatmul.mubr.msk.bf16.gmra.mxu1 %vm885_vm0, %v2260_v29 }
 0x659   : > { %2274 = shalt.err (!%p2271_p5)
}
 0x65a   : > { %s2275_s0 = scalar_lea.hbm %s2847_s8, 1024  ;;  %s2279_s5 = scalar_lea.hbm %s3018_s3, 2048 }
 0x65b   : > { %p2276_p6 = scmp.ne.s32.totalorder %s2847_s8, %s2275_s0  ;;  %p2280_p10 = scmp.lt.s32.totalorder %s2847_s8, %s3018_s3 }
 0x65c   : > { %p2281_p11 = scmp.lt.s32.totalorder %s2279_s5, %s2275_s0 }
 0x65d   : > { %p2277_p7 = pnand %p2276_p6, %p2534_p4 }
 0x65e   : > { %p2282_p12 = por %p2281_p11, %p2280_p10 }
 0x65f   : > { %p2278_p9 = pneg %p2277_p7 }
 0x661   : > { %p2283_p13 = pnand %p2282_p12, %p2278_p9 }
 0x663   : > { %2286 = shalt.err (!%p2283_p13)
}
 0x664   : > { %s2981_s20 = smov 256   ;;  %s2982_s4 = smov 16   ;;  %v1828_v0 = vpop.permute.xlu0 %1827  ;;  %v1833_v34 = vpop.permute.xlu1 %1832 }
 0x665   : > { %s3019_s22 = scalar_lea.sflag [#allocation3], %s2779_s1  ;;  %s3020_s9 = sshll.u32 %s2779_s1, 6 }
 0x666   : > { %2164 = dma.vmem_to_hbm [thread:$0]  (%p2534_p4), %s2849_s2, 1024, %s2847_s8, %s3019_s22, %s2981_s20, %s2981_s20, %s2982_s4  }
 0x667   : > { %s767_s28 = scalar_lea.vmem [#allocation4], %s3020_s9  ;;  %s3021_s2 = sshll.u32 %s2359_s25, 10 }
 0x668   : > { %v1838_v47 = vpop.permute.xlu0 %1837  ;;  %v1843_v52 = vpop.permute.xlu1 %1842  ;;  %s1961_s8 = sshll.u32 %s767_s28, 4  ;;  %s3022_s24 = sld [smem:[#allocation27_spill]]  ;;  %s2886_s8 = int_to_ptr.vmem [resolvable:$true] %s1961_s8 }
 0x669   : > { %s1928_s9 = scalar_lea.sflag [#allocation5], %s2779_s1  ;;  %s2287_s20 = scalar_lea.vmem %s2886_s8, 1024 }
 0x66a   : > { %p2288_p0 = scmp.ne.s32.totalorder %s2886_s8, %s2287_s20  ;;  %s2373_s4 = smov [#allocation4]  }
 0x66b   : > { %s2291_s3 = sshll.u32 %s2373_s4, 4  ;;  %s2292_s3 = int_to_ptr.vmem [resolvable:$false] %s2291_s3 }
 0x66c   : > { %p2289_p1 = pnand %p2288_p0, %p2534_p4  ;;  %s2293_s25 = scalar_lea.vmem %s2292_s3, 2048 }
 0x66d   : > { %p2294_p3 = scmp.lt.s32.totalorder %s2886_s8, %s2292_s3  ;;  %p2295_p5 = scmp.lt.s32.totalorder %s2293_s25, %s2287_s20 }
 0x66e   : > { %s3023_s22 = smov %s3022_s24  ;;  %s2884_s5 = scalar_lea.hbm %s3022_s24, %s3021_s2 }
 0x66f   : > { %p2290_p2 = pneg %p2289_p1  ;;  %p2296_p6 = por %p2295_p5, %p2294_p3 }
 0x671   : > { %p2297_p7 = pnand %p2296_p6, %p2290_p2 }
 0x710   : > { %v1895_v30 = vpop.f32.mrf.mxu1 }
 0x711   : > { %v1896_v31 = vadd.f32 %v1895_v30, %v1828_v0 }
 0x712   : > { %v1897_v32 = vpop.f32.mrf.mxu1 }
 0x713   : > { %1914 = vst [vmem:[%s767_s28] sm:$0xff] %v1896_v31  ;;  %v1898_v33 = vadd.f32 %v1897_v32, %v1828_v0 }
 0x714   : > { %v1899_v35 = vpop.f32.mrf.mxu1 }
 0x715   : > { %1915 = vst [vmem:[%s767_s28 + $0x8] sm:$0xff] %v1898_v33  ;;  %v1900_v36 = vadd.f32 %v1899_v35, %v1833_v34 }
 0x716   : > { %v1901_v37 = vpop.f32.mrf.mxu1 }
 0x717   : > { %1916 = vst [vmem:[%s767_s28 + $0x10] sm:$0xff] %v1900_v36  ;;  %v1902_v46 = vadd.f32 %v1901_v37, %v1833_v34 }
 0x718   : > { %v1905_v48 = vpop.f32.mrf.mxu1 }
 0x719   : > { %1917 = vst [vmem:[%s767_s28 + $0x18] sm:$0xff] %v1902_v46  ;;  %v1906_v49 = vadd.f32 %v1905_v48, %v1838_v47 }
 0x71a   : > { %v1907_v50 = vpop.f32.mrf.mxu1 }
 0x71b   : > { %1918 = vst [vmem:[%s767_s28 + $0x20] sm:$0xff] %v1906_v49  ;;  %v1908_v51 = vadd.f32 %v1907_v50, %v1838_v47 }
 0x71c   : > { %v1909_v53 = vpop.f32.mrf.mxu1 }
 0x71d   : > { %1919 = vst [vmem:[%s767_s28 + $0x28] sm:$0xff] %v1908_v51  ;;  %v1910_v54 = vadd.f32 %v1909_v53, %v1843_v52 }
 0x71e   : > { %v1911_v55 = vpop.f32.mrf.mxu1 }
 0x71f   : > { %1920 = vst [vmem:[%s767_s28 + $0x30] sm:$0xff] %v1910_v54  ;;  %v1912_v56 = vadd.f32 %v1911_v55, %v1843_v52 }
 0x721   : > { %1921 = vst [vmem:[%s767_s28 + $0x38] sm:$0xff] %v1912_v56 }
 0x722   : > { %2300 = shalt.err (!%p2297_p7)
}
 0x723   : > { %s2301_s28 = scalar_lea.hbm %s2884_s5, 1024  ;;  %s2305_s4 = scalar_lea.hbm %s3023_s22, 2048 }
 0x724   : > { %p2302_p9 = scmp.ne.s32.totalorder %s2884_s5, %s2301_s28  ;;  %p2306_p12 = scmp.lt.s32.totalorder %s2884_s5, %s3023_s22 }
 0x725   : > { %p2307_p13 = scmp.lt.s32.totalorder %s2305_s4, %s2301_s28 }
 0x726   : > { %p2303_p10 = pnand %p2302_p9, %p2534_p4 }
 0x727   : > { %p2308_p0 = por %p2307_p13, %p2306_p12 }
 0x728   : > { %p2304_p11 = pneg %p2303_p10 }
 0x72a   : > { %p2309_p1 = pnand %p2308_p0, %p2304_p11 }
 0x72c   : > { %2312 = shalt.err (!%p2309_p1)
}
 0x72d   : > { %s3024_s3 = smov 16   ;;  %s3025_s20 = smov 256  }
 0x72e   : > { %2165 = dma.vmem_to_hbm [thread:$0]  (%p2534_p4), %s2886_s8, 1024, %s2884_s5, %s1928_s9, %s3025_s20, %s3025_s20, %s3024_s3  }
 0x72f PF: > { %s3026_s24 = sld [smem:[#allocation11_spill]] }
 0x730   : > { %s3027_s25 = sld [smem:[#allocation8_spill]] }
 0x735   : > { %p2175_p2 = scmp.ge.s32.totalorder %s3026_s24, 2 }
 0x736   : > { %s1976_s2 = sand.u32 1, %s3027_s25  }
 0x737   : > { %p2169_p3 = pnand %p2175_p2, %p2541_p8  ;;  %s1977_s28 = scalar_lea.sflag [#allocation3], %s1976_s2 }
 0x739   : > { %p2170_p5 = pneg %p2169_p3 }
 0x73b   : > { %2338 = dma.done.wait (%p2170_p5), %s1977_s28, 1024  }
 0x73c   : > { %2340 = vsyncadd (%p2170_p5), %s1977_s28, 4294966272  ;;  %s1986_s4 = scalar_lea.sflag [#allocation5], %s1976_s2 }
 0x73d   : > { %2342 = dma.done.wait (%p2170_p5), %s1986_s4, 1024  }
 0x73e   : > { %2344 = vsyncadd (%p2170_p5), %s1986_s4, 4294966272  ;;  %s40_s1 = sadd.s32 1, %s3026_s24   ;;  %s3029_s7 = sld [smem:[#allocation9_spill]] }
 0x73f   : > { %p37_p6 = scmp.ge.s32.totalorder %s40_s1, 4   ;;  %s3030_s24 = sld [smem:[#allocation14_spill]] }
 0x740   : > { %s3031_s25 = sld [smem:[#allocation10_spill]]  ;;  %s3033_s4 = smov %s2351_s30 }
 0x741   : > { %s3032_s5 = sld [smem:[#allocation12_spill]]  ;;  %39 = sbr.rel (!%p37_p6) target bundleno = 20 (0x14), region = 163 }
 0x744   : > { %s3034_s30 = smov %s3029_s7 }
 0x746   :  { %1991 = vsyncpa [#allocation3], 1 }
 0x747   :  { %1993 = vsyncpa [#allocation3 + $0x1], 1 }
 0x748   :  { %1994 = vsyncpa [#allocation5], 1 }
 0x749   :  { %1996 = vsyncpa [#allocation5 + $0x1], 1 }

</bundles_post_ra>
